<compile_context>
chip_gen: v6e
topology: v6e:2x2x1
jax: 0.10.0
libtpu: 0.0.40
codegen_flags: <defaults>
</compile_context>

<pallas_src>
import functools

import numpy as np

import jax
import jax.numpy as jnp
from jax.experimental import pallas as pl
from jax.experimental.pallas import tpu as pltpu


def _round_up(x, m):
    return (x + m - 1) // m * m


def _plan_m_tiles(M, max_tile=256):
    """Balanced flat-row tiling: n_m tiles of tile_m rows (multiple of 8)."""
    n_m = -(-M // max_tile)                   # cdiv
    tile_m = _round_up(-(-M // n_m), 8)
    return tile_m, n_m


# ---------------------------------------------------------------------------
# Pallas kernel: stride-1 conv as shift-and-accumulate on a flattened image.
# ---------------------------------------------------------------------------
def _gconv_flat_kernel(x_ref, w_ref, b_ref, o_ref, *, k, Wp, tile_m):
    # x_ref : (1, HWp_pad, Cin)    f32   whole padded image, rows flattened
    # w_ref : (k*k, Cin, Cout_p)   bf16  tap-major weights (constant block)
    # b_ref : (1, Cout_p)          f32
    # o_ref : (1, tile_m, Cout_p)  bf16  one flat-row tile of the "wide" output
    cout_p = o_ref.shape[2]
    m0 = pl.multiple_of(pl.program_id(1) * tile_m, 8)

    acc = jnp.zeros((tile_m, cout_p), dtype=jnp.float32)
    for kh in range(k):                       # static python loop, k is small
        for kw in range(k):
            off = kh * Wp + kw                # static tap offset
            patch = x_ref[0, pl.ds(m0 + off, tile_m), :].astype(jnp.bfloat16)
            acc = acc + jnp.dot(patch, w_ref[kh * k + kw],
                                preferred_element_type=jnp.float32)
    o_ref[0] = (acc + b_ref[...]).astype(o_ref.dtype)


def conv2d_pallas(x_flat, w_taps, bias_p, Wp, k, tile_m, n_m,
                  out_dtype=jnp.bfloat16):
    # x_flat : (B, HWp_pad, Cin) f32, w_taps : (k*k, Cin, Cout_p) bf16,
    # bias_p : (1, Cout_p) f32  ->  (B, n_m*tile_m, Cout_p) out_dtype
    B, HWp_pad, Cin = x_flat.shape
    KK, _, Cout_p = w_taps.shape
    M_pad = tile_m * n_m
    out_itemsize = np.dtype(out_dtype).itemsize

    # Scoped-VMEM budget: double-buffered blocks + accumulator/internal
    # headroom, clamped to 80% of the *physical* VMEM of this generation
    # (v7x: 64 MiB -> ~51 MiB; v5e/v6e: 128 MiB -> ~102 MiB).
    try:
        vmem_cap = pltpu.get_tpu_info().vmem_capacity_bytes
    except Exception:                          # conservative (v7x-sized) fallback
        vmem_cap = 64 << 20
    est_bytes = (2 * HWp_pad * Cin * 4                 # x block (f32), 2 bufs
                 + 2 * KK * Cin * Cout_p * 2           # weights (bf16), 2 bufs
                 + 2 * Cout_p * 4                      # bias, 2 bufs
                 + 2 * tile_m * Cout_p * out_itemsize  # output tile, 2 bufs
                 + 4 * tile_m * Cout_p                 # f32 accumulator room
                 + (8 << 20))                          # Mosaic internal scratch
    vmem_limit = int(min(max(est_bytes, 32 << 20), int(vmem_cap * 0.8)))

    flops = 2 * B * M_pad * Cin * Cout_p * KK
    bytes_accessed = (B * HWp_pad * Cin * 4 + KK * Cin * Cout_p * 2
                      + Cout_p * 4 + B * M_pad * Cout_p * out_itemsize)

    kernel = functools.partial(_gconv_flat_kernel, k=k, Wp=Wp, tile_m=tile_m)
    return pl.pallas_call(
        kernel,
        out_shape=jax.ShapeDtypeStruct((B, M_pad, Cout_p), out_dtype),
        grid_spec=pltpu.PrefetchScalarGridSpec(
            num_scalar_prefetch=0,
            grid=(B, n_m),
            in_specs=[
                # Whole padded image; revisited across the m axis -> one DMA
                # per batch element.
                pl.BlockSpec((1, HWp_pad, Cin), lambda b, m: (b, 0, 0)),
                # Weights: constant block, DMA'd once.
                pl.BlockSpec((KK, Cin, Cout_p), lambda b, m: (0, 0, 0)),
                pl.BlockSpec((1, Cout_p), lambda b, m: (0, 0)),
            ],
            out_specs=pl.BlockSpec((1, tile_m, Cout_p),
                                   lambda b, m: (b, m, 0)),
        ),
        compiler_params=pltpu.CompilerParams(
            dimension_semantics=("parallel", "parallel"),
            vmem_limit_bytes=vmem_limit),
        cost_estimate=pl.CostEstimate(flops=int(flops), transcendentals=0,
                                      bytes_accessed=int(bytes_accessed)),
    )(x_flat, w_taps, bias_p)


# ---------------------------------------------------------------------------
# GroupConv2d parameter setup & forward (glue in plain JAX, conv in Pallas).
# ---------------------------------------------------------------------------
def rotate(x, r):
    return jnp.rot90(x, r, axes=(-2, -1))


def rotate_p4(y, r):
    assert y.ndim >= 3 and y.shape[-3] == 4
    return jnp.roll(rotate(y, r), r, axis=-3)


def build_filter(weight, bias, out_channels, in_channels, kernel_size):
    w0 = weight.reshape(out_channels, in_channels, 4, kernel_size, kernel_size)
    filt = jnp.stack(
        [w0, rotate_p4(w0, 1), rotate_p4(w0, 2), rotate_p4(w0, 3)], axis=1)
    # filt: (O, 4, I, 4, k, k)
    if bias is not None:
        _bias = jnp.tile(bias.reshape(out_channels, 1), (1, 4))    # (O, 4)
    else:
        _bias = jnp.zeros((out_channels, 4), dtype=weight.dtype)
    return filt, _bias


def _group_conv2d_nhwc(x, weight, bias, in_channels, out_channels,
                       kernel_size, padding):
    """Core forward; returns (B, Ho, Wo, out_channels*4) f32 (NHWC)."""
    B = x.shape[0]
    H, W = x.shape[-2], x.shape[-1]
    k = kernel_size
    Cin = in_channels * 4
    Cout = out_channels * 4
    Cout_p = _round_up(Cout, 128)                 # lane-dense MXU/store width
    Hp, Wp = H + 2 * padding, W + 2 * padding
    Ho, Wo = Hp - k + 1, Wp - k + 1
    M = (Ho - 1) * Wp + Wo                        # valid "wide" flat rows
    tile_m, n_m = _plan_m_tiles(M)
    M_pad = tile_m * n_m
    HWp_pad = M_pad + (k - 1) * Wp + (k - 1)      # rows touched by last tap

    filt, _bias = build_filter(weight, bias, out_channels, in_channels, k)
    filt = filt.reshape(Cout, Cin, k, k)                           # OIHW
    # (k, k, I, O) -> (k*k, I, O): contiguous 2-D weight tile per tap.
    w_taps = jnp.transpose(filt, (2, 3, 1, 0)).reshape(k * k, Cin, Cout)
    w_taps = jnp.pad(
        w_taps, ((0, 0), (0, 0), (0, Cout_p - Cout))).astype(jnp.bfloat16)
    bias_p = jnp.pad(_bias.reshape(1, Cout),
                     ((0, 0), (0, Cout_p - Cout))).astype(jnp.float32)

    # NCHW -> NHWC, spatial zero-pad, flatten rows, pad rows for M tiling.
    x_nhwc = jnp.transpose(x.reshape(B, Cin, H, W), (0, 2, 3, 1))
    x_pad = jnp.pad(x_nhwc, ((0, 0), (padding, padding),
                             (padding, padding), (0, 0)))
    x_flat = x_pad.reshape(B, Hp * Wp, Cin).astype(jnp.float32)
    x_flat = jnp.pad(x_flat, ((0, 0), (0, HWp_pad - Hp * Wp), (0, 0)))

    out_flat = conv2d_pallas(x_flat, w_taps, bias_p, Wp, k, tile_m, n_m)

    # Recover (B, Ho, Wo, Cout) from the wide flat rows; drop channel/row pad.
    out_valid = out_flat[:, :M, :Cout].astype(jnp.float32)
    out_wide = jnp.pad(out_valid, ((0, 0), (0, Ho * Wp - M), (0, 0)))
    return out_wide.reshape(B, Ho, Wp, Cout)[:, :, :Wo, :]


@functools.partial(jax.jit, static_argnums=(3, 4, 5, 6))
def group_conv2d_forward(x, weight, bias, in_channels, out_channels,
                         kernel_size, padding):
    # x: (B, in_channels, 4, H, W)  (PyTorch-style with explicit group axis)
    out_nhwc = _group_conv2d_nhwc(x, weight, bias, in_channels, out_channels,
                                  kernel_size, padding)
    # PyTorch-compatible (B, O, 4, Ho, Wo) layout.  TODO(synk): downstream
    # consumers should take the NHWC result directly and fold this permute
    # into the next op; it is a full extra read+write of the output in XLA.
    B, Ho, Wo, _ = out_nhwc.shape
    out_nchw = jnp.transpose(out_nhwc, (0, 3, 1, 2))
    return out_nchw.reshape(B, out_channels, 4, Ho, Wo)


# ---------------------------------------------------------------------------
# Reference (plain JAX) for a sanity check.  Uses the same bf16 quantization
# of x / weights as the kernel, with f32 accumulation.
# ---------------------------------------------------------------------------
def group_conv2d_reference(x, weight, bias, in_channels, out_channels,
                           kernel_size, padding):
    B = x.shape[0]
    H, W = x.shape[-2], x.shape[-1]
    filt, _bias = build_filter(weight, bias, out_channels, in_channels,
                               kernel_size)
    filt = filt.reshape(out_channels * 4, in_channels * 4,
                        kernel_size, kernel_size)
    _bias = _bias.reshape(out_channels * 4)
    x_nchw = x.reshape(B, in_channels * 4, H, W)
    x_bf = x_nchw.astype(jnp.bfloat16).astype(jnp.float32)
    w_bf = filt.astype(jnp.bfloat16).astype(jnp.float32)
    out = jax.lax.conv_general_dilated(
        x_bf, w_bf, window_strides=(1, 1),
        padding=[(padding, padding), (padding, padding)],
        dimension_numbers=("NCHW", "OIHW", "NCHW"),
        preferred_element_type=jnp.float32)
    out = out + _bias[None, :, None, None]
    return out.reshape(-1, out_channels, 4, out.shape[-2], out.shape[-1])


if __name__ == "__main__":
    # Small, module-consistent shapes.
    B = 2
    in_channels = 2
    out_channels = 2
    kernel_size = 3
    padding = 1
    H = W = 16

    key = jax.random.PRNGKey(0)
    k_x, k_w = jax.random.split(key)

    # Input in the PyTorch convention: (B, in_channels, 4, H, W)
    x = jax.random.normal(k_x, (B, in_channels, 4, H, W), dtype=jnp.float32)

    # Deterministic parameter init mirroring the module's __init__:
    #   weight = randn(O*I*4*k^2) / sqrt(O*I),  bias = zeros(O)
    n_w = out_channels * in_channels * 4 * kernel_size ** 2
    weight = jax.random.normal(k_w, (n_w,), dtype=jnp.float32) / jnp.sqrt(
        jnp.float32(out_channels * in_channels))
    bias = jnp.zeros((out_channels,), dtype=jnp.float32)

    out = group_conv2d_forward(x, weight, bias, in_channels, out_channels,
                               kernel_size, padding)
    out = jax.block_until_ready(out)

    ref = group_conv2d_reference(x, weight, bias, in_channels, out_channels,
                                 kernel_size, padding)
    assert out.shape == (B, out_channels, 4, H, W), out.shape
    err = float(jnp.max(jnp.abs(out - ref)))
    # The kernel stores bf16 (f32 accumulate, bf16 writeback); tolerance covers
    # that final-store rounding on top of the shared bf16 input quantization.
    assert jnp.allclose(out, ref, atol=3e-2, rtol=2e-2), f"mismatch {err}"

    print("KERNEL_OK")
</pallas_src>

<mosaic_0001>
module attributes {stable_mosaic.version = 11 : i64} {
  func.func @_gconv_flat_kernel(%arg0: i32, %arg1: i32, %arg2: memref<1x326x8xf32, #tpu.memory_space<vmem>>, %arg3: memref<9x8x128xbf16, #tpu.memory_space<vmem>>, %arg4: memref<1x128xf32, #tpu.memory_space<vmem>>, %arg5: memref<1x144x128xbf16, #tpu.memory_space<vmem>>) attributes {dimension_semantics = [#tpu.dimension_semantics<parallel>, #tpu.dimension_semantics<parallel>], iteration_bounds = array<i64: 2, 2>, scalar_prefetch = 0 : i64, scratch_operands = 0 : i64, tpu.core_type = #tpu.core_type<tc>, window_params = [{transform_indices = @transform_0, window_bounds = array<i64: 1, 326, 8>}, {pipeline_mode = #tpu.pipeline_mode<synchronous>, transform_indices = @transform_1, window_bounds = array<i64: 9, 8, 128>}, {pipeline_mode = #tpu.pipeline_mode<synchronous>, transform_indices = @transform_2, window_bounds = array<i64: 1, 128>}, {transform_indices = @transform_3, window_bounds = array<i64: 1, 144, 128>}]} {
    %c144_i32 = arith.constant 144 : i32
    %0 = arith.muli %arg1, %c144_i32 : i32
    %1 = tpu.assume_multiple %0, 8 : i32
    %cst = arith.constant 0.000000e+00 : f32
    %2 = vector.broadcast %cst : f32 to vector<144x128xf32>
    %c0_i32 = arith.constant 0 : i32
    %3 = arith.addi %1, %c0_i32 : i32
    %c0 = arith.constant 0 : index
    %4 = arith.index_cast %3 : i32 to index
    %c0_0 = arith.constant 0 : index
    %5 = vector.load %arg2[%c0, %4, %c0_0] : memref<1x326x8xf32, #tpu.memory_space<vmem>>, vector<1x144x8xf32>
    %6 = vector.shape_cast %5 : vector<1x144x8xf32> to vector<144x8xf32>
    %7 = arith.truncf %6 : vector<144x8xf32> to vector<144x8xbf16>
    %c0_1 = arith.constant 0 : index
    %c0_2 = arith.constant 0 : index
    %c0_3 = arith.constant 0 : index
    %8 = vector.load %arg3[%c0_1, %c0_2, %c0_3] : memref<9x8x128xbf16, #tpu.memory_space<vmem>>, vector<1x8x128xbf16>
    %9 = vector.shape_cast %8 : vector<1x8x128xbf16> to vector<8x128xbf16>
    %cst_4 = arith.constant dense<0.000000e+00> : vector<144x128xf32>
    %10 = tpu.matmul %7, %9, %cst_4 {dimension_numbers = #tpu.dot_dimension_numbers<[1], [0], [0], [1], [0, 0, 1, 1], [], []>} : vector<144x8xbf16>, vector<8x128xbf16>, vector<144x128xf32> -> vector<144x128xf32>
    %11 = arith.addf %2, %10 : vector<144x128xf32>
    %c1_i32 = arith.constant 1 : i32
    %12 = arith.addi %1, %c1_i32 : i32
    %c0_5 = arith.constant 0 : index
    %13 = arith.index_cast %12 : i32 to index
    %c0_6 = arith.constant 0 : index
    %14 = vector.load %arg2[%c0_5, %13, %c0_6] : memref<1x326x8xf32, #tpu.memory_space<vmem>>, vector<1x144x8xf32>
    %15 = vector.shape_cast %14 : vector<1x144x8xf32> to vector<144x8xf32>
    %16 = arith.truncf %15 : vector<144x8xf32> to vector<144x8xbf16>
    %c1 = arith.constant 1 : index
    %c0_7 = arith.constant 0 : index
    %c0_8 = arith.constant 0 : index
    %17 = vector.load %arg3[%c1, %c0_7, %c0_8] : memref<9x8x128xbf16, #tpu.memory_space<vmem>>, vector<1x8x128xbf16>
    %18 = vector.shape_cast %17 : vector<1x8x128xbf16> to vector<8x128xbf16>
    %cst_9 = arith.constant dense<0.000000e+00> : vector<144x128xf32>
    %19 = tpu.matmul %16, %18, %cst_9 {dimension_numbers = #tpu.dot_dimension_numbers<[1], [0], [0], [1], [0, 0, 1, 1], [], []>} : vector<144x8xbf16>, vector<8x128xbf16>, vector<144x128xf32> -> vector<144x128xf32>
    %20 = arith.addf %11, %19 : vector<144x128xf32>
    %c2_i32 = arith.constant 2 : i32
    %21 = arith.addi %1, %c2_i32 : i32
    %c0_10 = arith.constant 0 : index
    %22 = arith.index_cast %21 : i32 to index
    %c0_11 = arith.constant 0 : index
    %23 = vector.load %arg2[%c0_10, %22, %c0_11] : memref<1x326x8xf32, #tpu.memory_space<vmem>>, vector<1x144x8xf32>
    %24 = vector.shape_cast %23 : vector<1x144x8xf32> to vector<144x8xf32>
    %25 = arith.truncf %24 : vector<144x8xf32> to vector<144x8xbf16>
    %c2 = arith.constant 2 : index
    %c0_12 = arith.constant 0 : index
    %c0_13 = arith.constant 0 : index
    %26 = vector.load %arg3[%c2, %c0_12, %c0_13] : memref<9x8x128xbf16, #tpu.memory_space<vmem>>, vector<1x8x128xbf16>
    %27 = vector.shape_cast %26 : vector<1x8x128xbf16> to vector<8x128xbf16>
    %cst_14 = arith.constant dense<0.000000e+00> : vector<144x128xf32>
    %28 = tpu.matmul %25, %27, %cst_14 {dimension_numbers = #tpu.dot_dimension_numbers<[1], [0], [0], [1], [0, 0, 1, 1], [], []>} : vector<144x8xbf16>, vector<8x128xbf16>, vector<144x128xf32> -> vector<144x128xf32>
    %29 = arith.addf %20, %28 : vector<144x128xf32>
    %c18_i32 = arith.constant 18 : i32
    %30 = arith.addi %1, %c18_i32 : i32
    %c0_15 = arith.constant 0 : index
    %31 = arith.index_cast %30 : i32 to index
    %c0_16 = arith.constant 0 : index
    %32 = vector.load %arg2[%c0_15, %31, %c0_16] : memref<1x326x8xf32, #tpu.memory_space<vmem>>, vector<1x144x8xf32>
    %33 = vector.shape_cast %32 : vector<1x144x8xf32> to vector<144x8xf32>
    %34 = arith.truncf %33 : vector<144x8xf32> to vector<144x8xbf16>
    %c3 = arith.constant 3 : index
    %c0_17 = arith.constant 0 : index
    %c0_18 = arith.constant 0 : index
    %35 = vector.load %arg3[%c3, %c0_17, %c0_18] : memref<9x8x128xbf16, #tpu.memory_space<vmem>>, vector<1x8x128xbf16>
    %36 = vector.shape_cast %35 : vector<1x8x128xbf16> to vector<8x128xbf16>
    %cst_19 = arith.constant dense<0.000000e+00> : vector<144x128xf32>
    %37 = tpu.matmul %34, %36, %cst_19 {dimension_numbers = #tpu.dot_dimension_numbers<[1], [0], [0], [1], [0, 0, 1, 1], [], []>} : vector<144x8xbf16>, vector<8x128xbf16>, vector<144x128xf32> -> vector<144x128xf32>
    %38 = arith.addf %29, %37 : vector<144x128xf32>
    %c19_i32 = arith.constant 19 : i32
    %39 = arith.addi %1, %c19_i32 : i32
    %c0_20 = arith.constant 0 : index
    %40 = arith.index_cast %39 : i32 to index
    %c0_21 = arith.constant 0 : index
    %41 = vector.load %arg2[%c0_20, %40, %c0_21] : memref<1x326x8xf32, #tpu.memory_space<vmem>>, vector<1x144x8xf32>
    %42 = vector.shape_cast %41 : vector<1x144x8xf32> to vector<144x8xf32>
    %43 = arith.truncf %42 : vector<144x8xf32> to vector<144x8xbf16>
    %c4 = arith.constant 4 : index
    %c0_22 = arith.constant 0 : index
    %c0_23 = arith.constant 0 : index
    %44 = vector.load %arg3[%c4, %c0_22, %c0_23] : memref<9x8x128xbf16, #tpu.memory_space<vmem>>, vector<1x8x128xbf16>
    %45 = vector.shape_cast %44 : vector<1x8x128xbf16> to vector<8x128xbf16>
    %cst_24 = arith.constant dense<0.000000e+00> : vector<144x128xf32>
    %46 = tpu.matmul %43, %45, %cst_24 {dimension_numbers = #tpu.dot_dimension_numbers<[1], [0], [0], [1], [0, 0, 1, 1], [], []>} : vector<144x8xbf16>, vector<8x128xbf16>, vector<144x128xf32> -> vector<144x128xf32>
    %47 = arith.addf %38, %46 : vector<144x128xf32>
    %c20_i32 = arith.constant 20 : i32
    %48 = arith.addi %1, %c20_i32 : i32
    %c0_25 = arith.constant 0 : index
    %49 = arith.index_cast %48 : i32 to index
    %c0_26 = arith.constant 0 : index
    %50 = vector.load %arg2[%c0_25, %49, %c0_26] : memref<1x326x8xf32, #tpu.memory_space<vmem>>, vector<1x144x8xf32>
    %51 = vector.shape_cast %50 : vector<1x144x8xf32> to vector<144x8xf32>
    %52 = arith.truncf %51 : vector<144x8xf32> to vector<144x8xbf16>
    %c5 = arith.constant 5 : index
    %c0_27 = arith.constant 0 : index
    %c0_28 = arith.constant 0 : index
    %53 = vector.load %arg3[%c5, %c0_27, %c0_28] : memref<9x8x128xbf16, #tpu.memory_space<vmem>>, vector<1x8x128xbf16>
    %54 = vector.shape_cast %53 : vector<1x8x128xbf16> to vector<8x128xbf16>
    %cst_29 = arith.constant dense<0.000000e+00> : vector<144x128xf32>
    %55 = tpu.matmul %52, %54, %cst_29 {dimension_numbers = #tpu.dot_dimension_numbers<[1], [0], [0], [1], [0, 0, 1, 1], [], []>} : vector<144x8xbf16>, vector<8x128xbf16>, vector<144x128xf32> -> vector<144x128xf32>
    %56 = arith.addf %47, %55 : vector<144x128xf32>
    %c36_i32 = arith.constant 36 : i32
    %57 = arith.addi %1, %c36_i32 : i32
    %c0_30 = arith.constant 0 : index
    %58 = arith.index_cast %57 : i32 to index
    %c0_31 = arith.constant 0 : index
    %59 = vector.load %arg2[%c0_30, %58, %c0_31] : memref<1x326x8xf32, #tpu.memory_space<vmem>>, vector<1x144x8xf32>
    %60 = vector.shape_cast %59 : vector<1x144x8xf32> to vector<144x8xf32>
    %61 = arith.truncf %60 : vector<144x8xf32> to vector<144x8xbf16>
    %c6 = arith.constant 6 : index
    %c0_32 = arith.constant 0 : index
    %c0_33 = arith.constant 0 : index
    %62 = vector.load %arg3[%c6, %c0_32, %c0_33] : memref<9x8x128xbf16, #tpu.memory_space<vmem>>, vector<1x8x128xbf16>
    %63 = vector.shape_cast %62 : vector<1x8x128xbf16> to vector<8x128xbf16>
    %cst_34 = arith.constant dense<0.000000e+00> : vector<144x128xf32>
    %64 = tpu.matmul %61, %63, %cst_34 {dimension_numbers = #tpu.dot_dimension_numbers<[1], [0], [0], [1], [0, 0, 1, 1], [], []>} : vector<144x8xbf16>, vector<8x128xbf16>, vector<144x128xf32> -> vector<144x128xf32>
    %65 = arith.addf %56, %64 : vector<144x128xf32>
    %c37_i32 = arith.constant 37 : i32
    %66 = arith.addi %1, %c37_i32 : i32
    %c0_35 = arith.constant 0 : index
    %67 = arith.index_cast %66 : i32 to index
    %c0_36 = arith.constant 0 : index
    %68 = vector.load %arg2[%c0_35, %67, %c0_36] : memref<1x326x8xf32, #tpu.memory_space<vmem>>, vector<1x144x8xf32>
    %69 = vector.shape_cast %68 : vector<1x144x8xf32> to vector<144x8xf32>
    %70 = arith.truncf %69 : vector<144x8xf32> to vector<144x8xbf16>
    %c7 = arith.constant 7 : index
    %c0_37 = arith.constant 0 : index
    %c0_38 = arith.constant 0 : index
    %71 = vector.load %arg3[%c7, %c0_37, %c0_38] : memref<9x8x128xbf16, #tpu.memory_space<vmem>>, vector<1x8x128xbf16>
    %72 = vector.shape_cast %71 : vector<1x8x128xbf16> to vector<8x128xbf16>
    %cst_39 = arith.constant dense<0.000000e+00> : vector<144x128xf32>
    %73 = tpu.matmul %70, %72, %cst_39 {dimension_numbers = #tpu.dot_dimension_numbers<[1], [0], [0], [1], [0, 0, 1, 1], [], []>} : vector<144x8xbf16>, vector<8x128xbf16>, vector<144x128xf32> -> vector<144x128xf32>
    %74 = arith.addf %65, %73 : vector<144x128xf32>
    %c38_i32 = arith.constant 38 : i32
    %75 = arith.addi %1, %c38_i32 : i32
    %c0_40 = arith.constant 0 : index
    %76 = arith.index_cast %75 : i32 to index
    %c0_41 = arith.constant 0 : index
    %77 = vector.load %arg2[%c0_40, %76, %c0_41] : memref<1x326x8xf32, #tpu.memory_space<vmem>>, vector<1x144x8xf32>
    %78 = vector.shape_cast %77 : vector<1x144x8xf32> to vector<144x8xf32>
    %79 = arith.truncf %78 : vector<144x8xf32> to vector<144x8xbf16>
    %c8 = arith.constant 8 : index
    %c0_42 = arith.constant 0 : index
    %c0_43 = arith.constant 0 : index
    %80 = vector.load %arg3[%c8, %c0_42, %c0_43] : memref<9x8x128xbf16, #tpu.memory_space<vmem>>, vector<1x8x128xbf16>
    %81 = vector.shape_cast %80 : vector<1x8x128xbf16> to vector<8x128xbf16>
    %cst_44 = arith.constant dense<0.000000e+00> : vector<144x128xf32>
    %82 = tpu.matmul %79, %81, %cst_44 {dimension_numbers = #tpu.dot_dimension_numbers<[1], [0], [0], [1], [0, 0, 1, 1], [], []>} : vector<144x8xbf16>, vector<8x128xbf16>, vector<144x128xf32> -> vector<144x128xf32>
    %83 = arith.addf %74, %82 : vector<144x128xf32>
    %c0_45 = arith.constant 0 : index
    %c0_46 = arith.constant 0 : index
    %84 = vector.load %arg4[%c0_45, %c0_46] : memref<1x128xf32, #tpu.memory_space<vmem>>, vector<1x128xf32>
    %85 = vector.broadcast %84 : vector<1x128xf32> to vector<144x128xf32>
    %86 = arith.addf %83, %85 : vector<144x128xf32>
    %87 = arith.truncf %86 : vector<144x128xf32> to vector<144x128xbf16>
    %c0_47 = arith.constant 0 : index
    %c0_48 = arith.constant 0 : index
    %c0_49 = arith.constant 0 : index
    %88 = vector.load %arg5[%c0_47, %c0_48, %c0_49] : memref<1x144x128xbf16, #tpu.memory_space<vmem>>, vector<1x144x128xbf16>
    %89 = vector.shape_cast %88 : vector<1x144x128xbf16> to vector<144x128xbf16>
    %90 = vector.shape_cast %87 : vector<144x128xbf16> to vector<1x144x128xbf16>
    tpu.vector_store %arg5[%c0_47, %c0_48, %c0_49], %90 {strides = array<i32>} : memref<1x144x128xbf16, #tpu.memory_space<vmem>>, vector<1x144x128xbf16>,
    return
  }
  func.func @transform_0(%arg0: i32, %arg1: i32) -> (i32, i32, i32) {
    %c0_i32 = arith.constant 0 : i32
    %c0_i32_0 = arith.constant 0 : i32
    %c0_i32_1 = arith.constant 0 : i32
    return %arg0, %c0_i32, %c0_i32_0 : i32, i32, i32
  }
  func.func @transform_1(%arg0: i32, %arg1: i32) -> (i32, i32, i32) {
    %c0_i32 = arith.constant 0 : i32
    %c0_i32_0 = arith.constant 0 : i32
    %c0_i32_1 = arith.constant 0 : i32
    %c0_i32_2 = arith.constant 0 : i32
    return %c0_i32, %c0_i32_0, %c0_i32_1 : i32, i32, i32
  }
  func.func @transform_2(%arg0: i32, %arg1: i32) -> (i32, i32) {
    %c0_i32 = arith.constant 0 : i32
    %c0_i32_0 = arith.constant 0 : i32
    %c0_i32_1 = arith.constant 0 : i32
    return %c0_i32, %c0_i32_0 : i32, i32
  }
  func.func @transform_3(%arg0: i32, %arg1: i32) -> (i32, i32, i32) {
    %c0_i32 = arith.constant 0 : i32
    %c0_i32_0 = arith.constant 0 : i32
    return %arg0, %arg1, %c0_i32 : i32, i32, i32
  }
}

</mosaic_0001>

<bundles_post_ra>
// kernel: reverse.4
= control target key start
LH: loop header
LB: loop body
LE: loop exit
PB: predicated region body
PF: predicated region fallthrough
CT: control target
= control target key end

     0   :  { %v192_v10 = vlaneseq  ;;  %v351_v30 = vmov 0.0   ;;  %s381_s0 = inlined_call_operand.vmem [shape: bf16[2,2,1,3,3], index: 0, kind: input, shape index: {}]   ;;  %s382_s1 = inlined_call_operand.vmem [shape: bf16[2,2,1,3,3], index: 1, kind: output, shape index: {}]  }
   0x1   :  { %v19_v0 = vld [vmem:[%s381_s0] sm:$0x3]  ;;  %v21_v1 = vld [vmem:[%s381_s0 + $0x2] sm:$0x3]  ;;  %v23_v2 = vld [vmem:[%s381_s0 + $0x4] sm:$0x3] }
   0x2   :  { %20 = vst [vmem:[#allocation1 + $0x2] sm:$0x3] %v19_v0  ;;  %22 = vst [vmem:[#allocation1 + $0x6] sm:$0x3] %v21_v1  ;;  %v25_v3 = vld [vmem:[%s381_s0 + $0x6] sm:$0x3] }
   0x3   :  { %24 = vst [vmem:[#allocation1 + $0xa] sm:$0x3] %v23_v2  ;;  %26 = vst [vmem:[#allocation1 + $0xe] sm:$0x3] %v25_v3  ;;  %v193_v11 = vshrl.u32 %v192_v10, 7 }
   0x5   :  { %vm194_vm0 = vcmp.lt.s32.totalorder %v193_v11, 3 }
   0x9   :  { %v135_v4 = vld [vmem:[#allocation1] sm:$0xff]  }
   0xa   :  { %v71_v5 = vld [vmem:[#allocation1 + $0x8] sm:$0xff]   ;;  %v136_v6 = vunpack.c.h.bf16 %v135_v4  ;;  %v167_v7 = vunpack.c.l.bf16 %v135_v4 }
   0xb   :  { %v72_v8 = vunpack.c.h.bf16 %v71_v5  ;;  %v104_v9 = vunpack.c.l.bf16 %v71_v5 }
   0xc   :  { %139 = vst [vmem:[#allocation0 + $0x10] ss:$8 sps:$4 sm:$0xff] %v136_v6   ;;  %170 = vst [vmem:[#allocation0] ss:$8 sps:$4 sm:$0xff] %v167_v7  }
   0xd   :  { %75 = vst [vmem:[#allocation0 + $0x30] ss:$8 sps:$4 sm:$0xff] %v72_v8   ;;  %107 = vst [vmem:[#allocation0 + $0x20] ss:$8 sps:$4 sm:$0xff] %v104_v9  }
  0x13   :  { %v185_v12 = vld [vmem:[#allocation0 + $0x7] ss:$-1 sm:$0xff]  ;;  %v190_v13 = vld [vmem:[#allocation0 + $0xf] ss:$-1 sm:$0xff]  ;;  %v199_v14 = vld [vmem:[#allocation0 + $0x17] ss:$-1 sm:$0xff] }
  0x14   :  { %v186_v15 = vrot.slane %v185_v12, 5  ;;  %v191_v16 = vrot.slane %v190_v13, 5  ;;  %v200_v17 = vrot.slane %v199_v14, 5  ;;  %v204_v18 = vld [vmem:[#allocation0 + $0x1f] ss:$-1 sm:$0xff] }
  0x15   :  { %v205_v19 = vrot.slane %v204_v18, 5  ;;  %v213_v20 = vld [vmem:[#allocation0 + $0x27] ss:$-1 sm:$0xff]  ;;  %v218_v21 = vld [vmem:[#allocation0 + $0x2f] ss:$-1 sm:$0xff] }
  0x16   :  { %187 = vst [vmem:[#allocation2] sm:$0xff] %v186_v15  ;;  %201 = vst [vmem:[#allocation2 + $0x8] sm:$0xff] %v200_v17  ;;  %v214_v22 = vrot.slane %v213_v20, 5  ;;  %v219_v23 = vrot.slane %v218_v21, 5  ;;  %v227_v24 = vld [vmem:[#allocation0 + $0x37] ss:$-1 sm:$0xff] }
  0x17   :  { %v232_v25 = vld [vmem:[#allocation0 + $0x3f] ss:$-1 sm:$0xff]  ;;  %195 = vst.msk [vmem:[#allocation2] sm:$0xff] %vm194_vm0, %v191_v16  ;;  %209 = vst.msk [vmem:[#allocation2 + $0x8] sm:$0xff] %vm194_vm0, %v205_v19  ;;  %v228_v26 = vrot.slane %v227_v24, 5 }
  0x18   :  { %v233_v27 = vrot.slane %v232_v25, 5  ;;  %215 = vst [vmem:[#allocation2 + $0x10] sm:$0xff] %v214_v22 }
  0x19   :  { %223 = vst.msk [vmem:[#allocation2 + $0x10] sm:$0xff] %vm194_vm0, %v219_v23  ;;  %229 = vst [vmem:[#allocation2 + $0x18] sm:$0xff] %v228_v26 }
  0x1a   :  { %237 = vst.msk [vmem:[#allocation2 + $0x18] sm:$0xff] %vm194_vm0, %v233_v27 }
  0x1e   :  { %v243_v28 = vld [vmem:[#allocation2] sm:$0xf]  ;;  %v249_v29 = vld [vmem:[#allocation2 + $0x8] sm:$0xf] }
  0x1f   :  { %v244_v31 = vpack.c.bf16 %v351_v30, %v243_v28  ;;  %v250_v32 = vpack.c.bf16 %v351_v30, %v249_v29 }
  0x20   :  { %v256_v33 = vld [vmem:[#allocation2 + $0x10] sm:$0xf] }
  0x21   :  { %247 = vst [vmem:[#allocation3] sm:$0x3] %v244_v31  ;;  %254 = vst [vmem:[#allocation3 + $0x2] sm:$0x3] %v250_v32  ;;  %v257_v34 = vpack.c.bf16 %v351_v30, %v256_v33  ;;  %v264_v35 = vld [vmem:[#allocation2 + $0x18] sm:$0xf] }
  0x22   :  { %v265_v36 = vpack.c.bf16 %v351_v30, %v264_v35 }
  0x23   :  { %262 = vst [vmem:[#allocation3 + $0x4] sm:$0x3] %v257_v34 }
  0x24   :  { %270 = vst [vmem:[#allocation3 + $0x6] sm:$0x3] %v265_v36 }
  0x2b   :  { %v287_v37 = vld [vmem:[#allocation3] sm:$0xff]  }
  0x2c   :  { %288 = vst [vmem:[%s382_s1] sm:$0xff] %v287_v37  }

// kernel: reverse.3
= control target key start
LH: loop header
LB: loop body
LE: loop exit
PB: predicated region body
PF: predicated region fallthrough
CT: control target
= control target key end

     0   :  { %v480_v13 = vlaneseq  ;;  %s978_s0 = inlined_call_operand.vmem [shape: bf16[2,2,3,3,3], index: 0, kind: input, shape index: {}]   ;;  %s979_s1 = inlined_call_operand.vmem [shape: bf16[2,2,3,3,3], index: 1, kind: output, shape index: {}]  }
   0x1   :  { %v19_v0 = vld [vmem:[%s978_s0] sm:$0x3]  ;;  %v21_v1 = vld [vmem:[%s978_s0 + $0x2] sm:$0x3]  ;;  %v23_v2 = vld [vmem:[%s978_s0 + $0x4] sm:$0x3] }
   0x2   :  { %20 = vst [vmem:[#allocation1 + $0x2] sm:$0x3] %v19_v0  ;;  %22 = vst [vmem:[#allocation1 + $0x6] sm:$0x3] %v21_v1  ;;  %v25_v3 = vld [vmem:[%s978_s0 + $0x6] sm:$0x3] }
   0x3   :  { %24 = vst [vmem:[#allocation1 + $0xa] sm:$0x3] %v23_v2  ;;  %v27_v4 = vld [vmem:[%s978_s0 + $0x8] sm:$0x3]  ;;  %v29_v5 = vld [vmem:[%s978_s0 + $0xa] sm:$0x3] }
   0x4   :  { %26 = vst [vmem:[#allocation1 + $0xe] sm:$0x3] %v25_v3  ;;  %28 = vst [vmem:[#allocation1 + $0x12] sm:$0x3] %v27_v4  ;;  %v31_v6 = vld [vmem:[%s978_s0 + $0xc] sm:$0x3] }
   0x5   :  { %30 = vst [vmem:[#allocation1 + $0x16] sm:$0x3] %v29_v5  ;;  %v33_v7 = vld [vmem:[%s978_s0 + $0xe] sm:$0x3]  ;;  %v35_v8 = vld [vmem:[%s978_s0 + $0x10] sm:$0x3] }
   0x6   :  { %32 = vst [vmem:[#allocation1 + $0x1a] sm:$0x3] %v31_v6  ;;  %34 = vst [vmem:[#allocation1 + $0x1e] sm:$0x3] %v33_v7  ;;  %v37_v9 = vld [vmem:[%s978_s0 + $0x12] sm:$0x3] }
   0x7   :  { %36 = vst [vmem:[#allocation1 + $0x22] sm:$0x3] %v35_v8  ;;  %v39_v10 = vld [vmem:[%s978_s0 + $0x14] sm:$0x3]  ;;  %v41_v11 = vld [vmem:[%s978_s0 + $0x16] sm:$0x3] }
   0x8   :  { %38 = vst [vmem:[#allocation1 + $0x26] sm:$0x3] %v37_v9  ;;  %40 = vst [vmem:[#allocation1 + $0x2a] sm:$0x3] %v39_v10  ;;  %v942_v31 = vshrl.u32 %v480_v13, 7 }
   0x9   :  { %42 = vst [vmem:[#allocation1 + $0x2e] sm:$0x3] %v41_v11  ;;  %v423_v12 = vld [vmem:[#allocation1] sm:$0xff]  }
   0xa   :  { %v424_v15 = vunpack.c.h.bf16 %v423_v12  ;;  %v455_v16 = vunpack.c.l.bf16 %v423_v12  ;;  %vm482_vm0 = vcmp.lt.s32.totalorder %v942_v31, 3 }
   0xb   :  { %v359_v24 = vld [vmem:[#allocation1 + $0x8] sm:$0xff]  }
   0xc   :  { %v295_v14 = vld [vmem:[#allocation1 + $0x10] sm:$0xff]   ;;  %427 = vst [vmem:[#allocation0 + $0x10] ss:$8 sps:$4 sm:$0xff] %v424_v15   ;;  %458 = vst [vmem:[#allocation0] ss:$8 sps:$4 sm:$0xff] %v455_v16   ;;  %v360_v29 = vunpack.c.h.bf16 %v359_v24  ;;  %v392_v30 = vunpack.c.l.bf16 %v359_v24 }
   0xd   :  { %v231_v17 = vld [vmem:[#allocation1 + $0x18] sm:$0xff]   ;;  %v296_v18 = vunpack.c.h.bf16 %v295_v14  ;;  %v328_v19 = vunpack.c.l.bf16 %v295_v14 }
   0xe   :  { %v232_v22 = vunpack.c.h.bf16 %v231_v17  ;;  %v264_v23 = vunpack.c.l.bf16 %v231_v17  ;;  %363 = vst [vmem:[#allocation0 + $0x30] ss:$8 sps:$4 sm:$0xff] %v360_v29   ;;  %395 = vst [vmem:[#allocation0 + $0x20] ss:$8 sps:$4 sm:$0xff] %v392_v30  }
   0xf   :  { %v167_v21 = vld [vmem:[#allocation1 + $0x20] sm:$0xff]   ;;  %299 = vst [vmem:[#allocation0 + $0x50] ss:$8 sps:$4 sm:$0xff] %v296_v18   ;;  %331 = vst [vmem:[#allocation0 + $0x40] ss:$8 sps:$4 sm:$0xff] %v328_v19   ;;  %v895_v18 = vmov 0.0  }
  0x10   :  { %v103_v20 = vld [vmem:[#allocation1 + $0x28] sm:$0xff]   ;;  %v168_v27 = vunpack.c.h.bf16 %v167_v21  ;;  %v200_v28 = vunpack.c.l.bf16 %v167_v21  ;;  %235 = vst [vmem:[#allocation0 + $0x70] ss:$8 sps:$4 sm:$0xff] %v232_v22   ;;  %267 = vst [vmem:[#allocation0 + $0x60] ss:$8 sps:$4 sm:$0xff] %v264_v23  }
  0x11   :  { %v104_v25 = vunpack.c.h.bf16 %v103_v20  ;;  %v136_v26 = vunpack.c.l.bf16 %v103_v20 }
  0x12   :  { %171 = vst [vmem:[#allocation0 + $0x90] ss:$8 sps:$4 sm:$0xff] %v168_v27   ;;  %203 = vst [vmem:[#allocation0 + $0x80] ss:$8 sps:$4 sm:$0xff] %v200_v28  }
  0x13   :  { %107 = vst [vmem:[#allocation0 + $0xb0] ss:$8 sps:$4 sm:$0xff] %v104_v25   ;;  %139 = vst [vmem:[#allocation0 + $0xa0] ss:$8 sps:$4 sm:$0xff] %v136_v26   ;;  %v473_v32 = vld [vmem:[#allocation0 + $0x7] ss:$-1 sm:$0xff] }
  0x14   :  { %v478_v33 = vld [vmem:[#allocation0 + $0xf] ss:$-1 sm:$0xff]  ;;  %v487_v34 = vld [vmem:[#allocation0 + $0x17] ss:$-1 sm:$0xff]  ;;  %v474_v35 = vrot.slane %v473_v32, 5 }
  0x15   :  { %v479_v36 = vrot.slane %v478_v33, 5  ;;  %v488_v37 = vrot.slane %v487_v34, 5  ;;  %v492_v38 = vld [vmem:[#allocation0 + $0x1f] ss:$-1 sm:$0xff]  ;;  %v501_v50 = vld [vmem:[#allocation0 + $0x27] ss:$-1 sm:$0xff] }
  0x16   :  { %v493_v39 = vrot.slane %v492_v38, 5  ;;  %v529_v40 = vld [vmem:[#allocation0 + $0x47] ss:$-1 sm:$0xff]  ;;  %v534_v41 = vld [vmem:[#allocation0 + $0x4f] ss:$-1 sm:$0xff]  ;;  %475 = vst [vmem:[#allocation2] sm:$0xff] %v474_v35 }
  0x17   :  { %489 = vst [vmem:[#allocation2 + $0x8] sm:$0xff] %v488_v37  ;;  %v530_v42 = vrot.slane %v529_v40, 5  ;;  %v535_v43 = vrot.slane %v534_v41, 5  ;;  %v543_v44 = vld [vmem:[#allocation0 + $0x57] ss:$-1 sm:$0xff]  ;;  %483 = vst.msk [vmem:[#allocation2] sm:$0xff] %vm482_vm0, %v479_v36 }
  0x18   :  { %v548_v45 = vld [vmem:[#allocation0 + $0x5f] ss:$-1 sm:$0xff]  ;;  %497 = vst.msk [vmem:[#allocation2 + $0x8] sm:$0xff] %vm482_vm0, %v493_v39  ;;  %v544_v46 = vrot.slane %v543_v44, 5  ;;  %v557_v48 = vld [vmem:[#allocation0 + $0x67] ss:$-1 sm:$0xff] }
  0x19   :  { %v549_v47 = vrot.slane %v548_v45, 5  ;;  %v562_v49 = vld [vmem:[#allocation0 + $0x6f] ss:$-1 sm:$0xff]  ;;  %v515_v52 = vld [vmem:[#allocation0 + $0x37] ss:$-1 sm:$0xff]  ;;  %531 = vst [vmem:[#allocation2 + $0x20] sm:$0xff] %v530_v42 }
  0x1a   :  { %v506_v51 = vld [vmem:[#allocation0 + $0x2f] ss:$-1 sm:$0xff]  ;;  %v502_v53 = vrot.slane %v501_v50, 5  ;;  %v516_v55 = vrot.slane %v515_v52, 5  ;;  %v520_v56 = vld [vmem:[#allocation0 + $0x3f] ss:$-1 sm:$0xff] }
  0x1b   :  { %v507_v54 = vrot.slane %v506_v51, 5  ;;  %539 = vst.msk [vmem:[#allocation2 + $0x20] sm:$0xff] %vm482_vm0, %v535_v43  ;;  %545 = vst [vmem:[#allocation2 + $0x28] sm:$0xff] %v544_v46  ;;  %v558_v57 = vrot.slane %v557_v48, 5  ;;  %v521_v58 = vrot.slane %v520_v56, 5  ;;  %v563_v59 = vrot.slane %v562_v49, 5 }
  0x1c   :  { %553 = vst.msk [vmem:[#allocation2 + $0x28] sm:$0xff] %vm482_vm0, %v549_v47  ;;  %v571_v60 = vld [vmem:[#allocation0 + $0x77] ss:$-1 sm:$0xff]  ;;  %v576_v61 = vld [vmem:[#allocation0 + $0x7f] ss:$-1 sm:$0xff]  ;;  %503 = vst [vmem:[#allocation2 + $0x10] sm:$0xff] %v502_v53 }
  0x1d   :  { %517 = vst [vmem:[#allocation2 + $0x18] sm:$0xff] %v516_v55  ;;  %559 = vst [vmem:[#allocation2 + $0x30] sm:$0xff] %v558_v57  ;;  %v572_v62 = vrot.slane %v571_v60, 5  ;;  %v577_v63 = vrot.slane %v576_v61, 5  ;;  %v585_v0 = vld [vmem:[#allocation0 + $0x87] ss:$-1 sm:$0xff] }
  0x1e   :  { %v590_v1 = vld [vmem:[#allocation0 + $0x8f] ss:$-1 sm:$0xff]  ;;  %511 = vst.msk [vmem:[#allocation2 + $0x10] sm:$0xff] %vm482_vm0, %v507_v54  ;;  %525 = vst.msk [vmem:[#allocation2 + $0x18] sm:$0xff] %vm482_vm0, %v521_v58  ;;  %v586_v2 = vrot.slane %v585_v0, 5 }
  0x1f   :  { %567 = vst.msk [vmem:[#allocation2 + $0x30] sm:$0xff] %vm482_vm0, %v563_v59  ;;  %v591_v3 = vrot.slane %v590_v1, 5  ;;  %v599_v4 = vld [vmem:[#allocation0 + $0x97] ss:$-1 sm:$0xff]  ;;  %v604_v5 = vld [vmem:[#allocation0 + $0x9f] ss:$-1 sm:$0xff] }
  0x20   :  { %573 = vst [vmem:[#allocation2 + $0x38] sm:$0xff] %v572_v62  ;;  %v600_v6 = vrot.slane %v599_v4, 5  ;;  %v605_v7 = vrot.slane %v604_v5, 5  ;;  %v613_v8 = vld [vmem:[#allocation0 + $0xa7] ss:$-1 sm:$0xff]  ;;  %587 = vst [vmem:[#allocation2 + $0x40] sm:$0xff] %v586_v2 }
  0x21   :  { %v618_v9 = vld [vmem:[#allocation0 + $0xaf] ss:$-1 sm:$0xff]  ;;  %581 = vst.msk [vmem:[#allocation2 + $0x38] sm:$0xff] %vm482_vm0, %v577_v63  ;;  %v614_v10 = vrot.slane %v613_v8, 5  ;;  %v627_v12 = vld [vmem:[#allocation0 + $0xb7] ss:$-1 sm:$0xff] }
  0x22   :  { %v619_v11 = vrot.slane %v618_v9, 5  ;;  %v632_v13 = vld [vmem:[#allocation0 + $0xbf] ss:$-1 sm:$0xff]  ;;  %595 = vst.msk [vmem:[#allocation2 + $0x40] sm:$0xff] %vm482_vm0, %v591_v3  ;;  %601 = vst [vmem:[#allocation2 + $0x48] sm:$0xff] %v600_v6  ;;  %v628_v14 = vrot.slane %v627_v12, 5 }
  0x23   :  { %v633_v15 = vrot.slane %v632_v13, 5  ;;  %v643_v16 = vld [vmem:[#allocation2] sm:$0xf]  ;;  %v649_v17 = vld [vmem:[#allocation2 + $0x8] sm:$0xf]  ;;  %609 = vst.msk [vmem:[#allocation2 + $0x48] sm:$0xff] %vm482_vm0, %v605_v7 }
  0x24   :  { %615 = vst [vmem:[#allocation2 + $0x50] sm:$0xff] %v614_v10  ;;  %v644_v19 = vpack.c.bf16 %v895_v18, %v643_v16  ;;  %v650_v20 = vpack.c.bf16 %v895_v18, %v649_v17  ;;  %v672_v21 = vld [vmem:[#allocation2 + $0x20] sm:$0xf]  ;;  %629 = vst [vmem:[#allocation2 + $0x58] sm:$0xff] %v628_v14  ;;  %v680_v23 = vld [vmem:[#allocation2 + $0x28] sm:$0xf] }
  0x25   :  { %623 = vst.msk [vmem:[#allocation2 + $0x50] sm:$0xff] %vm482_vm0, %v619_v11  ;;  %v673_v22 = vpack.c.bf16 %v895_v18, %v672_v21  ;;  %637 = vst.msk [vmem:[#allocation2 + $0x58] sm:$0xff] %vm482_vm0, %v633_v15  ;;  %v681_v24 = vpack.c.bf16 %v895_v18, %v680_v23  ;;  %v656_v25 = vld [vmem:[#allocation2 + $0x10] sm:$0xf]  ;;  %v664_v26 = vld [vmem:[#allocation2 + $0x18] sm:$0xf] }
  0x26   :  { %647 = vst [vmem:[#allocation3] sm:$0x3] %v644_v19  ;;  %654 = vst [vmem:[#allocation3 + $0x2] sm:$0x3] %v650_v20  ;;  %v688_v27 = vld [vmem:[#allocation2 + $0x30] sm:$0xf]  ;;  %v657_v28 = vpack.c.bf16 %v895_v18, %v656_v25  ;;  %v665_v29 = vpack.c.bf16 %v895_v18, %v664_v26 }
  0x27   :  { %678 = vst [vmem:[#allocation3 + $0x8] sm:$0x3] %v673_v22  ;;  %686 = vst [vmem:[#allocation3 + $0xa] sm:$0x3] %v681_v24  ;;  %v689_v30 = vpack.c.bf16 %v895_v18, %v688_v27 }
  0x28   :  { %v696_v31 = vld [vmem:[#allocation2 + $0x38] sm:$0xf]  ;;  %662 = vst [vmem:[#allocation3 + $0x4] sm:$0x3] %v657_v28  ;;  %670 = vst [vmem:[#allocation3 + $0x6] sm:$0x3] %v665_v29 }
  0x29   :  { %694 = vst [vmem:[#allocation3 + $0xc] sm:$0x3] %v689_v30  ;;  %v697_v32 = vpack.c.bf16 %v895_v18, %v696_v31  ;;  %v704_v33 = vld [vmem:[#allocation2 + $0x40] sm:$0xf] }
  0x2a   :  { %v705_v34 = vpack.c.bf16 %v895_v18, %v704_v33  ;;  %v712_v35 = vld [vmem:[#allocation2 + $0x48] sm:$0xf] }
  0x2b   :  { %702 = vst [vmem:[#allocation3 + $0xe] sm:$0x3] %v697_v32  ;;  %v713_v36 = vpack.c.bf16 %v895_v18, %v712_v35 }
  0x2c   :  { %v720_v37 = vld [vmem:[#allocation2 + $0x50] sm:$0xf]  ;;  %710 = vst [vmem:[#allocation3 + $0x10] sm:$0x3] %v705_v34  ;;  %v728_v39 = vld [vmem:[#allocation2 + $0x58] sm:$0xf] }
  0x2d   :  { %v721_v38 = vpack.c.bf16 %v895_v18, %v720_v37  ;;  %718 = vst [vmem:[#allocation3 + $0x12] sm:$0x3] %v713_v36  ;;  %v729_v40 = vpack.c.bf16 %v895_v18, %v728_v39 }
  0x2f   :  { %726 = vst [vmem:[#allocation3 + $0x14] sm:$0x3] %v721_v38  ;;  %734 = vst [vmem:[#allocation3 + $0x16] sm:$0x3] %v729_v40  ;;  %v751_v41 = vld [vmem:[#allocation3] sm:$0xff]  }
  0x30   :  { %752 = vst [vmem:[%s979_s1] sm:$0xff] %v751_v41  }
  0x32   :  { %v759_v42 = vld [vmem:[#allocation3 + $0x8] sm:$0xff]  }
  0x33   :  { %760 = vst [vmem:[%s979_s1 + $0x8] sm:$0xff] %v759_v42  }
  0x36   :  { %v767_v43 = vld [vmem:[#allocation3 + $0x10] sm:$0xff]  }
  0x37   :  { %768 = vst [vmem:[%s979_s1 + $0x10] sm:$0xff] %v767_v43  }

// kernel: reverse.2
= control target key start
LH: loop header
LB: loop body
LE: loop exit
PB: predicated region body
PF: predicated region fallthrough
CT: control target
= control target key end

     0   :  { %v2_v0 = vlaneseq  ;;  %s713_s0 = inlined_call_operand.vmem [shape: bf16[2,2,2,3,3], index: 0, kind: input, shape index: {}]   ;;  %s714_s1 = inlined_call_operand.vmem [shape: bf16[2,2,2,3,3], index: 1, kind: output, shape index: {}]  }
   0x2   :  { %v3_v1 = vsub.s32 2, %v2_v0 }
   0x4   :  { %4 = vset.pattern.permute.xlu0 %v3_v1 }
   0x5   :  { %658 = vset.pattern.permute.xlu1 %v3_v1  ;;  %v327_v2 = vld [vmem:[#allocation1] ss:$8 sps:$2 sm:$0xf]   ;;  %v298_v3 = vld [vmem:[#allocation1 + $0x4] ss:$8 sps:$2 sm:$0xf]  }
   0x6   :  { %v328_v4 = vunpack.c.l.bf16 %v327_v2  ;;  %v299_v5 = vunpack.c.l.bf16 %v298_v3  ;;  %v202_v6 = vld [vmem:[#allocation1 + $0x10] ss:$4 sps:$2 sm:$0xf]   ;;  %v138_v7 = vld [vmem:[#allocation1 + $0x18] ss:$4 sps:$2 sm:$0xf]  }
   0x7   :  { %v203_v8 = vunpack.c.l.bf16 %v202_v6  ;;  %v139_v9 = vunpack.c.l.bf16 %v138_v7  ;;  %v24_v10 = vld [vmem:[%s713_s0 + $0x2] sm:$0x3]  ;;  %v22_v11 = vld [vmem:[%s713_s0] sm:$0x3]  ;;  %v28_v12 = vld [vmem:[%s713_s0 + $0x6] sm:$0x3] }
   0x8   :  { %330 = vst [vmem:[#allocation0] sm:$0xf] %v328_v4  ;;  %270 = vst [vmem:[#allocation0 + $0x1c] sm:$0xf0] %v328_v4  ;;  %v26_v13 = vld [vmem:[%s713_s0 + $0x4] sm:$0x3] }
   0x9   :  { %302 = vst [vmem:[#allocation0 + $0x10] sm:$0xf] %v299_v5  ;;  %238 = vst [vmem:[#allocation0 + $0x2c] sm:$0xf0] %v299_v5  ;;  %v32_v14 = vld [vmem:[%s713_s0 + $0xa] sm:$0x3] }
   0xa   :  { %25 = vst [vmem:[#allocation1 + $0x6] sm:$0x3] %v24_v10  ;;  %23 = vst [vmem:[#allocation1 + $0x2] sm:$0x3] %v22_v11  ;;  %v30_v15 = vld [vmem:[%s713_s0 + $0x8] sm:$0x3] }
   0xb   :  { %29 = vst [vmem:[#allocation1 + $0xe] sm:$0x3] %v28_v12  ;;  %206 = vst [vmem:[#allocation0 + $0x40] ss:$16 sps:$4 sm:$0xff] %v203_v8   ;;  %v36_v16 = vld [vmem:[%s713_s0 + $0xe] sm:$0x3] }
   0xc   :  { %142 = vst [vmem:[#allocation0 + $0x60] ss:$16 sps:$4 sm:$0xff] %v139_v9   ;;  %27 = vst [vmem:[#allocation1 + $0xa] sm:$0x3] %v26_v13  ;;  %v34_v17 = vld [vmem:[%s713_s0 + $0xc] sm:$0x3] }
   0xd   :  { %33 = vst [vmem:[#allocation1 + $0x16] sm:$0x3] %v32_v14  ;;  %31 = vst [vmem:[#allocation1 + $0x12] sm:$0x3] %v30_v15  ;;  %v344_v0 = vshrl.u32 %v2_v0, 7 }
   0xe   :  { %37 = vst [vmem:[#allocation1 + $0x1e] sm:$0x3] %v36_v16  ;;  %35 = vst [vmem:[#allocation1 + $0x1a] sm:$0x3] %v34_v17 }
   0xf   :  { %v332_v18 = vld [vmem:[#allocation0 + $0x7] ss:$-1 sm:$0xff]  ;;  %vm345_vm0 = vcmp.lt.s32.totalorder %v344_v0, 3 }
  0x10   :  { %v368_v19 = vld [vmem:[#allocation0 + $0x27] ss:$-1 sm:$0xff]  ;;  %v350_v20 = vld [vmem:[#allocation0 + $0x17] ss:$-1 sm:$0xff]  ;;  %v333_v21 = vrot.slane %v332_v18, 5 }
  0x11   :  { %v369_v22 = vrot.slane %v368_v19, 5  ;;  %v386_v23 = vld [vmem:[#allocation0 + $0x37] ss:$-1 sm:$0xff]  ;;  %v351_v25 = vrot.slane %v350_v20, 5  ;;  %v282_v29 = vld [vmem:[#allocation1 + $0x6] sm:$0x3] }
  0x12   :  { %v404_v24 = vld [vmem:[#allocation0 + $0x47] ss:$-1 sm:$0xff]  ;;  %334 = vperm.xlu0 %4, %v333_v21   ;;  %v387_v26 = vrot.slane %v386_v23, 5  ;;  %v422_v27 = vld [vmem:[#allocation0 + $0x57] ss:$-1 sm:$0xff]  ;;  %v283_v31 = vunpack.c.l.bf16 %v282_v29  ;;  %v659_v19 = vmov 0.0  }
  0x13   :  { %370 = vperm.xlu1 %658, %v369_v22   ;;  %v405_v28 = vrot.slane %v404_v24, 5  ;;  %v313_v30 = vld [vmem:[#allocation1 + $0x2] sm:$0x3]  ;;  %v218_v33 = vld [vmem:[#allocation1 + $0xe] sm:$0x3]  ;;  %v423_v42 = vrot.slane %v422_v27, 5 }
  0x14   :  { %v314_v32 = vunpack.c.l.bf16 %v313_v30  ;;  %v250_v34 = vld [vmem:[#allocation1 + $0xa] sm:$0x3]  ;;  %v154_v35 = vld [vmem:[#allocation1 + $0x16] sm:$0x3]  ;;  %v219_v36 = vunpack.c.l.bf16 %v218_v33  ;;  %v186_v39 = vld [vmem:[#allocation1 + $0x12] sm:$0x3] }
  0x15   :  { %v251_v37 = vunpack.c.l.bf16 %v250_v34  ;;  %v155_v38 = vunpack.c.l.bf16 %v154_v35  ;;  %v90_v40 = vld [vmem:[#allocation1 + $0x1e] sm:$0x3]  ;;  %v122_v41 = vld [vmem:[#allocation1 + $0x1a] sm:$0x3]  ;;  %286 = vst [vmem:[#allocation0 + $0x18] sm:$0xf] %v283_v31  ;;  %v187_v43 = vunpack.c.l.bf16 %v186_v39 }
  0x16   :  { %352 = vperm.xlu0 %4, %v351_v25   ;;  %317 = vst [vmem:[#allocation0 + $0x8] sm:$0xf] %v314_v32  ;;  %v91_v44 = vunpack.c.l.bf16 %v90_v40  ;;  %v123_v45 = vunpack.c.l.bf16 %v122_v41  ;;  %v440_v46 = vld [vmem:[#allocation0 + $0x67] ss:$-1 sm:$0xff]  ;;  %v458_v47 = vld [vmem:[#allocation0 + $0x77] ss:$-1 sm:$0xff] }
  0x17   :  { %388 = vperm.xlu1 %658, %v387_v26   ;;  %222 = vst [vmem:[#allocation0 + $0x38] sm:$0xf] %v219_v36  ;;  %254 = vst [vmem:[#allocation0 + $0x28] sm:$0xf] %v251_v37  ;;  %v441_v48 = vrot.slane %v440_v46, 5  ;;  %v459_v49 = vrot.slane %v458_v47, 5 }
  0x18   :  { %158 = vst [vmem:[#allocation0 + $0x58] sm:$0xf] %v155_v38  ;;  %190 = vst [vmem:[#allocation0 + $0x48] sm:$0xf] %v187_v43 }
  0x19   :  { %94 = vst [vmem:[#allocation0 + $0x78] sm:$0xf] %v91_v44  ;;  %126 = vst [vmem:[#allocation0 + $0x68] sm:$0xf] %v123_v45 }
  0x1a   :  { %406 = vperm.xlu0 %4, %v405_v28  }
  0x1b   :  { %424 = vperm.xlu1 %658, %v423_v42  }
  0x1c   :  { %v357_v50 = vld [vmem:[#allocation0 + $0x1f] ss:$-1 sm:$0xff] }
  0x1d   :  { %v339_v51 = vld [vmem:[#allocation0 + $0xf] ss:$-1 sm:$0xff]  ;;  %v358_v52 = vrot.slane %v357_v50, 5 }
  0x1e   :  { %442 = vperm.xlu0 %4, %v441_v48   ;;  %v340_v53 = vrot.slane %v339_v51, 5  ;;  %v393_v54 = vld [vmem:[#allocation0 + $0x3f] ss:$-1 sm:$0xff]  ;;  %v375_v55 = vld [vmem:[#allocation0 + $0x2f] ss:$-1 sm:$0xff] }
  0x1f   :  { %460 = vperm.xlu1 %658, %v459_v49   ;;  %v394_v56 = vrot.slane %v393_v54, 5  ;;  %v376_v57 = vrot.slane %v375_v55, 5  ;;  %v429_v58 = vld [vmem:[#allocation0 + $0x5f] ss:$-1 sm:$0xff]  ;;  %v411_v59 = vld [vmem:[#allocation0 + $0x4f] ss:$-1 sm:$0xff] }
  0x20   :  { %v430_v60 = vrot.slane %v429_v58, 5  ;;  %v412_v61 = vrot.slane %v411_v59, 5  ;;  %v465_v62 = vld [vmem:[#allocation0 + $0x7f] ss:$-1 sm:$0xff]  ;;  %v447_v63 = vld [vmem:[#allocation0 + $0x6f] ss:$-1 sm:$0xff] }
  0x21   :  { %v466_v1 = vrot.slane %v465_v62, 5  ;;  %v448_v2 = vrot.slane %v447_v63, 5 }
  0x22   :  { %341 = vperm.xlu0 %4, %v340_v53  }
  0x23   :  { %359 = vperm.xlu1 %658, %v358_v52  }
  0x26   :  { %377 = vperm.xlu0 %4, %v376_v57  }
  0x27   :  { %395 = vperm.xlu1 %658, %v394_v56  }
  0x2a   :  { %413 = vperm.xlu0 %4, %v412_v61  }
  0x2b   :  { %431 = vperm.xlu1 %658, %v430_v60  }
  0x2e   :  { %449 = vperm.xlu0 %4, %v448_v2  }
  0x2f   :  { %467 = vperm.xlu1 %658, %v466_v1  }
  0x8d   :  { %v335_v3 = vpop.permute.xlu0 %334 }
  0x8e   :  { %v371_v4 = vpop.permute.xlu1 %370  ;;  %336 = vst [vmem:[#allocation2] sm:$0xff] %v335_v3 }
  0x8f   :  { %372 = vst [vmem:[#allocation2 + $0x10] sm:$0xff] %v371_v4 }
  0x91   :  { %v353_v5 = vpop.permute.xlu0 %352 }
  0x92   :  { %v389_v6 = vpop.permute.xlu1 %388  ;;  %354 = vst [vmem:[#allocation2 + $0x8] sm:$0xff] %v353_v5 }
  0x93   :  { %390 = vst [vmem:[#allocation2 + $0x18] sm:$0xff] %v389_v6 }
  0x95   :  { %v407_v7 = vpop.permute.xlu0 %406 }
  0x96   :  { %v425_v8 = vpop.permute.xlu1 %424  ;;  %408 = vst [vmem:[#allocation2 + $0x20] sm:$0xff] %v407_v7 }
  0x97   :  { %426 = vst [vmem:[#allocation2 + $0x28] sm:$0xff] %v425_v8 }
  0x99   :  { %v443_v9 = vpop.permute.xlu0 %442 }
  0x9a   :  { %v461_v10 = vpop.permute.xlu1 %460  ;;  %444 = vst [vmem:[#allocation2 + $0x30] sm:$0xff] %v443_v9 }
  0x9b   :  { %462 = vst [vmem:[#allocation2 + $0x38] sm:$0xff] %v461_v10 }
  0x9d   :  { %v342_v12 = vpop.permute.xlu0 %341 }
  0x9e   :  { %v360_v11 = vpop.permute.xlu1 %359  ;;  %346 = vst.msk [vmem:[#allocation2] sm:$0xff] %vm345_vm0, %v342_v12 }
  0x9f   :  { %364 = vst.msk [vmem:[#allocation2 + $0x8] sm:$0xff] %vm345_vm0, %v360_v11 }
  0xa1   :  { %v378_v14 = vpop.permute.xlu0 %377 }
  0xa2   :  { %v396_v13 = vpop.permute.xlu1 %395  ;;  %382 = vst.msk [vmem:[#allocation2 + $0x10] sm:$0xff] %vm345_vm0, %v378_v14 }
  0xa3   :  { %400 = vst.msk [vmem:[#allocation2 + $0x18] sm:$0xff] %vm345_vm0, %v396_v13 }
  0xa5   :  { %v478_v16 = vld [vmem:[#allocation2] sm:$0xf]  ;;  %v414_v18 = vpop.permute.xlu0 %413 }
  0xa6   :  { %v484_v15 = vld [vmem:[#allocation2 + $0x8] sm:$0xf]  ;;  %v432_v17 = vpop.permute.xlu1 %431  ;;  %v479_v21 = vpack.c.bf16 %v659_v19, %v478_v16  ;;  %418 = vst.msk [vmem:[#allocation2 + $0x20] sm:$0xff] %vm345_vm0, %v414_v18 }
  0xa7   :  { %v485_v20 = vpack.c.bf16 %v659_v19, %v484_v15  ;;  %436 = vst.msk [vmem:[#allocation2 + $0x28] sm:$0xff] %vm345_vm0, %v432_v17 }
  0xa8   :  { %482 = vst [vmem:[#allocation3] sm:$0x3] %v479_v21 }
  0xa9   :  { %489 = vst [vmem:[#allocation3 + $0x2] sm:$0x3] %v485_v20  ;;  %v491_v23 = vld [vmem:[#allocation2 + $0x10] sm:$0xf]  ;;  %v450_v25 = vpop.permute.xlu0 %449 }
  0xaa   :  { %v499_v22 = vld [vmem:[#allocation2 + $0x18] sm:$0xf]  ;;  %v468_v24 = vpop.permute.xlu1 %467  ;;  %v492_v27 = vpack.c.bf16 %v659_v19, %v491_v23  ;;  %454 = vst.msk [vmem:[#allocation2 + $0x30] sm:$0xff] %vm345_vm0, %v450_v25 }
  0xab   :  { %v500_v26 = vpack.c.bf16 %v659_v19, %v499_v22  ;;  %472 = vst.msk [vmem:[#allocation2 + $0x38] sm:$0xff] %vm345_vm0, %v468_v24 }
  0xac   :  { %497 = vst [vmem:[#allocation3 + $0x4] sm:$0x3] %v492_v27 }
  0xad   :  { %505 = vst [vmem:[#allocation3 + $0x6] sm:$0x3] %v500_v26  ;;  %v507_v29 = vld [vmem:[#allocation2 + $0x20] sm:$0xf] }
  0xae   :  { %v515_v28 = vld [vmem:[#allocation2 + $0x28] sm:$0xf]  ;;  %v508_v31 = vpack.c.bf16 %v659_v19, %v507_v29 }
  0xaf   :  { %v516_v30 = vpack.c.bf16 %v659_v19, %v515_v28 }
  0xb0   :  { %v556_v32 = vld [vmem:[#allocation3] sm:$0xf]   ;;  %513 = vst [vmem:[#allocation3 + $0x8] sm:$0x3] %v508_v31 }
  0xb1   :  { %557 = vst [vmem:[%s714_s1] sm:$0xf] %v556_v32   ;;  %521 = vst [vmem:[#allocation3 + $0xa] sm:$0x3] %v516_v30  ;;  %v523_v34 = vld [vmem:[#allocation2 + $0x30] sm:$0xf] }
  0xb2   :  { %v531_v33 = vld [vmem:[#allocation2 + $0x38] sm:$0xf]  ;;  %v524_v35 = vpack.c.bf16 %v659_v19, %v523_v34 }
  0xb3   :  { %v532_v36 = vpack.c.bf16 %v659_v19, %v531_v33 }
  0xb4   :  { %v560_v37 = vld [vmem:[#allocation3 + $0x4] sm:$0xf]   ;;  %529 = vst [vmem:[#allocation3 + $0xc] sm:$0x3] %v524_v35 }
  0xb5   :  { %561 = vst [vmem:[%s714_s1 + $0x4] sm:$0xf] %v560_v37   ;;  %537 = vst [vmem:[#allocation3 + $0xe] sm:$0x3] %v532_v36 }
  0xbc   :  { %v562_v38 = vld [vmem:[#allocation3 + $0x8] sm:$0xff]  }
  0xbd   :  { %563 = vst [vmem:[%s714_s1 + $0x8] sm:$0xff] %v562_v38  }

// kernel: group_conv2d_forward.1
= control target key start
LH: loop header
LB: loop body
LE: loop exit
PB: predicated region body
PF: predicated region fallthrough
CT: control target
= control target key end

     0   :  { %s2913_s12 = smov 0   ;;  %s2915_s13 = smov 0   ;;  %s3667_s0 = inlined_call_operand.vmem [shape: f32[2,326,8], index: 0, kind: input, shape index: {}]   ;;  %s3668_s1 = inlined_call_operand.vmem [shape: bf16[9,8,128], index: 1, kind: input, shape index: {}]   ;;  %s3669_s2 = inlined_call_operand.vmem [shape: f32[1,128], index: 2, kind: input, shape index: {}]   ;;  %s3670_s3 = inlined_call_operand.vmem [shape: bf16[2,288,128], index: 3, kind: output, shape index: {}]  }
   0x1   :  { %s2917_s14 = smov 0   ;;  %s2919_s15 = smov 0  }
   0x2   :  { %s2921_s16 = smov 0  }
   0x3 LB: > { %s22_s17 = sadd.s32 1, %s2881_s14  ;;  %s25_s18 = sadd.s32 1, %s2885_s15  ;;  %s2889_s16 = sphi %s2921_s16, %s13_s16   ;;  %s2885_s15 = sphi %s2919_s15, %s3674_s15   ;;  %s2881_s14 = sphi %s2917_s14, %s3673_s14   ;;  %s2877_s13 = sphi %s2915_s13, %s3672_s13   ;;  %s2873_s12 = sphi %s2913_s12, %s3671_s12  }
   0x4   : > { %p23_p0 = scmp.ge.s32.totalorder %s22_s17, 2  ;;  %p2045_p1 = scmp.ge.s32.totalorder %s2889_s16, 1 }
   0x5   : > { %p151_p2 = scmp.lt.s32.totalorder %s2889_s16, 5 }
   0x6   : > { %s3676_s17 = smov (%p23_p0, %s22_s17), 0  ;;  %s3678_s18 = smov (!%p23_p0, %s25_s18), %s2885_s15 }
   0x7   : > { %p152_p3 = pnand %p2045_p1, %p151_p2  ;;  %p27_p4 = scmp.ge.s32.totalorder %s3678_s18, 2 }
   0x8   : > { %p179_p5 = scmp.lt.s32.totalorder (!%p152_p3), %s2877_s13, 1  ;;  %s195_s21 = smul.u32 (!%p152_p3), 144, %s2873_s12 }
   0x9   : > { %s3680_s18 = smov (%p27_p4, %s3678_s18), 0  ;;  %155 = sbr.rel (%p152_p3) target bundleno = 546 (0x222), region = 32 }
   0xa   : > { %s184_s23 = smul.u32 (!%p152_p3), 18, %s2873_s12 }
   0xc   : > { %p187_p6 = scmp.lt.s32.totalorder (!%p152_p3), %s184_s23, 35 }
   0xe   : > { %v2066_v0 = vld [vmem:[%s3668_s1 + $0x4] sm:$0xf]  ;;  %vm284_vm0 = vcmask 1043456   ;;  %v2891_v1 = vmov 0.0   ;;  %s3682_s13 = smov (!%p179_p5, %s2877_s13), 1  ;;  %vm2892_vm1 = vmmov 0  }
   0xf   : > { %2463 = vmatprep.subr.bf16.mxu0 %v2891_v1  ;;  %2805 = vmatprep.subr.bf16.mxu1 %v2891_v1  ;;  %v286_v2 = vsel %vm284_vm0, %v2066_v0, 0  ;;  %s2807_s22 = smul.u32 328, %s3682_s13  ;;  %v2103_v3 = vld [vmem:[%s3668_s1 + $0x8] sm:$0xf]  ;;  %v224_v4 = vld [vmem:[%s3668_s1] sm:$0xf] }
  0x10   : > { %2464 = vmatpush3.bf16.msra.mxu0 %v286_v2  ;;  %2806 = vmatpush3.bf16.msra.mxu1 %v286_v2  ;;  %vm256_vm2 = vcmask 64512   ;;  %v587_v10 = vsel %vm284_vm0, %v2103_v3, 0  ;;  %v421_v12 = vsel %vm284_vm0, %v224_v4, 0  ;;  %v2131_v36 = vld [vmem:[%s3668_s1 + $0xc] sm:$0xf]  ;;  %s2808_s24 = smul.u32 36, %s3682_s13 }
  0x11   : > { %2465 = vmatprep.mubr.msk.bf16.mxu0 %vm2892_vm1, %v2891_v1  ;;  %2485 = vmatprep.mubr.msk.bf16.mxu1 %vm2892_vm1, %v2891_v1  ;;  %s183_s25 = scalar_lea.vmem %s3667_s0, %s2807_s22  ;;  %v771_v38 = vsel %vm284_vm0, %v2131_v36, 0  ;;  %v2159_v43 = vld [vmem:[%s3668_s1 + $0x10] sm:$0xf]  ;;  %s3684_s23 = smov (!%p187_p6, %s184_s23), 35 }
  0x12   : > { %2539 = vmatprep.subr.bf16.mxu0 %v2891_v1  ;;  %2501 = vmatprep.subr.bf16.mxu1 %v2891_v1  ;;  %s2967_s28 = scalar_lea.vmem %s183_s25, %s195_s21  ;;  %v955_v46 = vsel %vm284_vm0, %v2159_v43, 0  ;;  %s190_s12 = sadd.s32 %s2808_s24, %s3684_s23 }
  0x13   : > { %v2048_v5 = vld [vmem:[%s2967_s28 + $0x1] sm:$0xff]  ;;  %v2049_v6 = vld [vmem:[%s2967_s28 + $0x9] sm:$0xff]  ;;  %v2058_v7 = vld [vmem:[%s2967_s28 + $0x51] sm:$0xff]  ;;  %s2047_s13 = sshll.u32 %s190_s12, 2 }
  0x14   : > { %v245_v8 = vpack.c.bf16 %v2049_v6, %v2048_v5  ;;  %v2059_v9 = vld [vmem:[%s2967_s28 + $0x59] sm:$0xff]  ;;  %v2050_v13 = vld [vmem:[%s2967_s28 + $0x11] sm:$0xff]  ;;  %v2060_v15 = vld [vmem:[%s2967_s28 + $0x61] sm:$0xff]  ;;  %s3609_s29 = scalar_lea.vmem %s3670_s3, %s2047_s13 }
  0x15   : > { %v250_v11 = vpack.c.bf16 %v2059_v9, %v2058_v7  ;;  %v2051_v14 = vld [vmem:[%s2967_s28 + $0x19] sm:$0xff]  ;;  %v2061_v16 = vld [vmem:[%s2967_s28 + $0x69] sm:$0xff]  ;;  %v2052_v19 = vld [vmem:[%s2967_s28 + $0x21] sm:$0xff] }
  0x16   : > { %2466 = vmatmul.mubr.msk.bf16.vlgmr.msra.gmra.mxu0 %vm256_vm2, %v245_v8  ;;  %v246_v17 = vpack.c.bf16 %v2051_v14, %v2050_v13  ;;  %v251_v18 = vpack.c.bf16 %v2061_v16, %v2060_v15  ;;  %v2053_v20 = vld [vmem:[%s2967_s28 + $0x29] sm:$0xff]  ;;  %v2062_v21 = vld [vmem:[%s2967_s28 + $0x71] sm:$0xff]  ;;  %v2063_v22 = vld [vmem:[%s2967_s28 + $0x79] sm:$0xff] }
  0x17   : > { %2486 = vmatmul.mubr.msk.bf16.vlgmr.msra.gmra.mxu1 %vm256_vm2, %v250_v11  ;;  %2540 = vmatpush3.bf16.msra.mxu0 %v587_v10  ;;  %v247_v23 = vpack.c.bf16 %v2053_v20, %v2052_v19  ;;  %v252_v24 = vpack.c.bf16 %v2063_v22, %v2062_v21  ;;  %v2054_v25 = vld [vmem:[%s2967_s28 + $0x31] sm:$0xff]  ;;  %v2055_v26 = vld [vmem:[%s2967_s28 + $0x39] sm:$0xff]  ;;  %v2064_v27 = vld [vmem:[%s2967_s28 + $0x81] sm:$0xff] }
  0x18   : > { %2502 = vmatpush3.bf16.msra.mxu1 %v421_v12  ;;  %2469 = vmatprep.mubr.msk.bf16.mxu0 %vm2892_vm1, %v2891_v1  ;;  %v2065_v28 = vld [vmem:[%s2967_s28 + $0x89] sm:$0xff]  ;;  %v248_v29 = vpack.c.bf16 %v2055_v26, %v2054_v25  ;;  %v2056_v31 = vld [vmem:[%s2967_s28 + $0x41] sm:$0xff]  ;;  %v200_v42 = vld [vmem:[%s2967_s28 + $0x18] sm:$0xff] }
  0x19   : > { %2489 = vmatprep.mubr.msk.bf16.mxu1 %vm2892_vm1, %v2891_v1  ;;  %2577 = vmatprep.subr.bf16.mxu1 %v2891_v1  ;;  %v253_v30 = vpack.c.bf16 %v2065_v28, %v2064_v27  ;;  %v2057_v32 = vld [vmem:[%s2967_s28 + $0x49] sm:$0xff]  ;;  %v197_v33 = vld [vmem:[%s2967_s28] sm:$0xff]  ;;  %v2087_v47 = vld [vmem:[%s2967_s28 + $0x12] sm:$0xff] }
  0x1a   : > { %2615 = vmatprep.subr.bf16.mxu0 %v2891_v1  ;;  %v198_v34 = vld [vmem:[%s2967_s28 + $0x8] sm:$0xff]  ;;  %v249_v35 = vpack.c.bf16 %v2057_v32, %v2056_v31  ;;  %v199_v41 = vld [vmem:[%s2967_s28 + $0x10] sm:$0xff]  ;;  %v2088_v48 = vld [vmem:[%s2967_s28 + $0x1a] sm:$0xff] }
  0x1b   : > { %v215_v37 = vpack.c.bf16 %v198_v34, %v197_v33  ;;  %v2085_v39 = vld [vmem:[%s2967_s28 + $0x2] sm:$0xff]  ;;  %v2086_v40 = vld [vmem:[%s2967_s28 + $0xa] sm:$0xff]  ;;  %v216_v45 = vpack.c.bf16 %v200_v42, %v199_v41  ;;  %v3050_v51 = vpack.c.bf16 %v2088_v48, %v2087_v47  ;;  %v204_v56 = vld [vmem:[%s2967_s28 + $0x38] sm:$0xff] }
  0x1c   : > { %v548_v44 = vpack.c.bf16 %v2086_v40, %v2085_v39  ;;  %v201_v49 = vld [vmem:[%s2967_s28 + $0x20] sm:$0xff]  ;;  %v202_v50 = vld [vmem:[%s2967_s28 + $0x28] sm:$0xff]  ;;  %v203_v55 = vld [vmem:[%s2967_s28 + $0x30] sm:$0xff] }
  0x1d   : > { %v217_v52 = vpack.c.bf16 %v202_v50, %v201_v49  ;;  %v2089_v53 = vld [vmem:[%s2967_s28 + $0x22] sm:$0xff]  ;;  %v2090_v54 = vld [vmem:[%s2967_s28 + $0x2a] sm:$0xff]  ;;  %v218_v58 = vpack.c.bf16 %v204_v56, %v203_v55  ;;  %v2091_v59 = vld [vmem:[%s2967_s28 + $0x32] sm:$0xff] }
  0x1e   : > { %2470 = vmatmul.mubr.msk.bf16.gmra.mxu0 %vm256_vm2, %v246_v17  ;;  %v3063_v57 = vpack.c.bf16 %v2090_v54, %v2089_v53  ;;  %v2092_v60 = vld [vmem:[%s2967_s28 + $0x3a] sm:$0xff]  ;;  %v206_v62 = vld [vmem:[%s2967_s28 + $0x48] sm:$0xff]  ;;  %v207_v4 = vld [vmem:[%s2967_s28 + $0x50] sm:$0xff] }
  0x1f   : > { %2490 = vmatmul.mubr.msk.bf16.gmra.mxu1 %vm256_vm2, %v251_v18  ;;  %2473 = vmatprep.mubr.msk.bf16.mxu0 %vm2892_vm1, %v2891_v1  ;;  %v205_v61 = vld [vmem:[%s2967_s28 + $0x40] sm:$0xff]  ;;  %v3076_v63 = vpack.c.bf16 %v2092_v60, %v2091_v59  ;;  %v2094_v3 = vld [vmem:[%s2967_s28 + $0x4a] sm:$0xff]  ;;  %v208_v5 = vld [vmem:[%s2967_s28 + $0x58] sm:$0xff] }
  0x20   : > { %2493 = vmatprep.mubr.msk.bf16.mxu1 %vm2892_vm1, %v2891_v1  ;;  %v219_v0 = vpack.c.bf16 %v206_v62, %v205_v61  ;;  %v2093_v2 = vld [vmem:[%s2967_s28 + $0x42] sm:$0xff]  ;;  %v220_v7 = vpack.c.bf16 %v208_v5, %v207_v4  ;;  %v2095_v8 = vld [vmem:[%s2967_s28 + $0x52] sm:$0xff]  ;;  %v2096_v9 = vld [vmem:[%s2967_s28 + $0x5a] sm:$0xff] }
  0x21   : > { %v3089_v6 = vpack.c.bf16 %v2094_v3, %v2093_v2  ;;  %v209_v10 = vld [vmem:[%s2967_s28 + $0x60] sm:$0xff]  ;;  %v210_v11 = vld [vmem:[%s2967_s28 + $0x68] sm:$0xff]  ;;  %v3102_v12 = vpack.c.bf16 %v2096_v9, %v2095_v8  ;;  %v211_v16 = vld [vmem:[%s2967_s28 + $0x70] sm:$0xff] }
  0x22   : > { %v221_v13 = vpack.c.bf16 %v210_v11, %v209_v10  ;;  %v2097_v14 = vld [vmem:[%s2967_s28 + $0x62] sm:$0xff]  ;;  %v2098_v15 = vld [vmem:[%s2967_s28 + $0x6a] sm:$0xff]  ;;  %v212_v17 = vld [vmem:[%s2967_s28 + $0x78] sm:$0xff] }
  0x23   : > { %v3115_v18 = vpack.c.bf16 %v2098_v15, %v2097_v14  ;;  %v222_v19 = vpack.c.bf16 %v212_v17, %v211_v16  ;;  %v2099_v20 = vld [vmem:[%s2967_s28 + $0x72] sm:$0xff]  ;;  %v2100_v21 = vld [vmem:[%s2967_s28 + $0x7a] sm:$0xff]  ;;  %v2101_v26 = vld [vmem:[%s2967_s28 + $0x82] sm:$0xff] }
  0x24   : > { %v213_v22 = vld [vmem:[%s2967_s28 + $0x80] sm:$0xff]  ;;  %v2102_v27 = vld [vmem:[%s2967_s28 + $0x8a] sm:$0xff]  ;;  %v2141_v31 = vld [vmem:[%s2967_s28 + $0x13] sm:$0xff] }
  0x25   : > { %v556_v28 = vpack.c.bf16 %v2102_v27, %v2101_v26  ;;  %v2142_v32 = vld [vmem:[%s2967_s28 + $0x1b] sm:$0xff]  ;;  %v2143_v36 = vld [vmem:[%s2967_s28 + $0x23] sm:$0xff]  ;;  %v2145_v39 = vld [vmem:[%s2967_s28 + $0x33] sm:$0xff] }
  0x26   : > { %2474 = vmatmul.mubr.msk.bf16.gmra.mxu0 %vm256_vm2, %v247_v23  ;;  %v214_v23 = vld [vmem:[%s2967_s28 + $0x88] sm:$0xff]  ;;  %v2215_v33 = vld [vmem:[%s3668_s1 + $0x18] sm:$0xf]  ;;  %v916_v34 = vpack.c.bf16 %v2142_v32, %v2141_v31  ;;  %v2243_v2 = vld [vmem:[%s3668_s1 + $0x1c] sm:$0xf] }
  0x27   : > { %2494 = vmatmul.mubr.msk.bf16.gmra.mxu1 %vm256_vm2, %v252_v24  ;;  %2477 = vmatprep.mubr.msk.bf16.mxu0 %vm2892_vm1, %v2891_v1  ;;  %v555_v24 = vpack.c.bf16 %v2100_v21, %v2099_v20  ;;  %v223_v25 = vpack.c.bf16 %v214_v23, %v213_v22  ;;  %v2146_v40 = vld [vmem:[%s2967_s28 + $0x3b] sm:$0xff]  ;;  %v2147_v42 = vld [vmem:[%s2967_s28 + $0x43] sm:$0xff]  ;;  %v2148_v43 = vld [vmem:[%s2967_s28 + $0x4b] sm:$0xff]  ;;  %v1507_v4 = vsel %vm284_vm0, %v2243_v2, 0 }
  0x28   : > { %2497 = vmatprep.mubr.msk.bf16.mxu1 %vm2892_vm1, %v2891_v1  ;;  %v918_v41 = vpack.c.bf16 %v2146_v40, %v2145_v39  ;;  %v2151_v48 = vld [vmem:[%s2967_s28 + $0x63] sm:$0xff]  ;;  %v2152_v49 = vld [vmem:[%s2967_s28 + $0x6b] sm:$0xff]  ;;  %v2157_v60 = vld [vmem:[%s2967_s28 + $0x93] sm:$0xff] }
  0x29   : > { %v921_v50 = vpack.c.bf16 %v2152_v49, %v2151_v48  ;;  %v2155_v54 = vld [vmem:[%s2967_s28 + $0x83] sm:$0xff]  ;;  %v2156_v55 = vld [vmem:[%s2967_s28 + $0x8b] sm:$0xff]  ;;  %v2158_v61 = vld [vmem:[%s2967_s28 + $0x9b] sm:$0xff] }
  0x2a   : > { %v2129_v56 = vld [vmem:[%s2967_s28 + $0x92] sm:$0xff]  ;;  %v2171_v5 = vld [vmem:[%s2967_s28 + $0x24] sm:$0xff]  ;;  %v2174_v11 = vld [vmem:[%s2967_s28 + $0x3c] sm:$0xff] }
  0x2b   : > { %v2169_v62 = vld [vmem:[%s2967_s28 + $0x14] sm:$0xff]  ;;  %v2175_v15 = vld [vmem:[%s2967_s28 + $0x44] sm:$0xff]  ;;  %v2176_v16 = vld [vmem:[%s2967_s28 + $0x4c] sm:$0xff] }
  0x2c   : > { %v2173_v10 = vld [vmem:[%s2967_s28 + $0x34] sm:$0xff]  ;;  %v1103_v20 = vpack.c.bf16 %v2176_v16, %v2175_v15  ;;  %v2178_v27 = vld [vmem:[%s2967_s28 + $0x5c] sm:$0xff] }
  0x2d   : > { %v2177_v26 = vld [vmem:[%s2967_s28 + $0x54] sm:$0xff]  ;;  %v2182_v49 = vld [vmem:[%s2967_s28 + $0x7c] sm:$0xff] }
  0x2e   : > { %2478 = vmatmul.mubr.msk.bf16.gmra.mxu0 %vm256_vm2, %v248_v29  ;;  %v2187_v29 = vld [vmem:[%s3668_s1 + $0x14] sm:$0xf]  ;;  %v1104_v31 = vpack.c.bf16 %v2178_v27, %v2177_v26 }
  0x2f   : > { %2498 = vmatmul.mubr.msk.bf16.gmra.mxu1 %vm256_vm2, %v253_v30  ;;  %2481 = vmatprep.mubr.msk.bf16.mxu0 %vm2892_vm1, %v2891_v1  ;;  %v1139_v30 = vsel %vm284_vm0, %v2187_v29, 0  ;;  %v2181_v48 = vld [vmem:[%s2967_s28 + $0x74] sm:$0xff] }
  0x30   : > { %2503 = vmatprep.mubr.msk.bf16.mxu1 %vm2892_vm1, %v2891_v1 }
  0x36   : > { %2482 = vmatmul.mubr.msk.bf16.gmra.mxu0 %vm256_vm2, %v249_v35  ;;  %v1323_v35 = vsel %vm284_vm0, %v2215_v33, 0 }
  0x37   : > { %2504 = vmatmul.mubr.msk.bf16.vlgmr.msra.gmra.mxu1 %vm256_vm2, %v215_v37  ;;  %2541 = vmatprep.mubr.msk.bf16.mxu0 %vm2892_vm1, %v2891_v1  ;;  %v2144_v37 = vld [vmem:[%s2967_s28 + $0x2b] sm:$0xff] }
  0x38   : > { %2578 = vmatpush3.bf16.msra.mxu1 %v771_v38  ;;  %2507 = vmatprep.mubr.msk.bf16.mxu1 %vm2892_vm1, %v2891_v1  ;;  %v917_v38 = vpack.c.bf16 %v2144_v37, %v2143_v36  ;;  %v2179_v37 = vld [vmem:[%s2967_s28 + $0x64] sm:$0xff] }
  0x39   : > { %2653 = vmatprep.subr.bf16.mxu1 %v2891_v1 }
  0x3e   : > { %2542 = vmatmul.mubr.msk.bf16.vlgmr.msra.gmra.mxu0 %vm256_vm2, %v548_v44  ;;  %v919_v44 = vpack.c.bf16 %v2148_v43, %v2147_v42 }
  0x3f   : > { %2508 = vmatmul.mubr.msk.bf16.gmra.mxu1 %vm256_vm2, %v216_v45  ;;  %2616 = vmatpush3.bf16.msra.mxu0 %v955_v46  ;;  %v2149_v45 = vld [vmem:[%s2967_s28 + $0x53] sm:$0xff]  ;;  %v2150_v46 = vld [vmem:[%s2967_s28 + $0x5b] sm:$0xff] }
  0x40   : > { %2511 = vmatprep.mubr.msk.bf16.mxu1 %vm2892_vm1, %v2891_v1  ;;  %2545 = vmatprep.mubr.msk.bf16.mxu0 %vm2892_vm1, %v2891_v1  ;;  %v920_v47 = vpack.c.bf16 %v2150_v46, %v2149_v45 }
  0x41   : > { %2691 = vmatprep.subr.bf16.mxu0 %v2891_v1 }
  0x46   : > { %2546 = vmatmul.mubr.msk.bf16.gmra.mxu0 %vm256_vm2, %v3050_v51 }
  0x47   : > { %2512 = vmatmul.mubr.msk.bf16.gmra.mxu1 %vm256_vm2, %v217_v52  ;;  %2549 = vmatprep.mubr.msk.bf16.mxu0 %vm2892_vm1, %v2891_v1  ;;  %v2154_v52 = vld [vmem:[%s2967_s28 + $0x7b] sm:$0xff] }
  0x48   : > { %2515 = vmatprep.mubr.msk.bf16.mxu1 %vm2892_vm1, %v2891_v1 }
  0x4e   : > { %2550 = vmatmul.mubr.msk.bf16.gmra.mxu0 %vm256_vm2, %v3063_v57 }
  0x4f   : > { %2516 = vmatmul.mubr.msk.bf16.gmra.mxu1 %vm256_vm2, %v218_v58  ;;  %2553 = vmatprep.mubr.msk.bf16.mxu0 %vm2892_vm1, %v2891_v1  ;;  %v923_v58 = vpack.c.bf16 %v2156_v55, %v2155_v54 }
  0x50   : > { %2519 = vmatprep.mubr.msk.bf16.mxu1 %vm2892_vm1, %v2891_v1 }
  0x56   : > { %2554 = vmatmul.mubr.msk.bf16.gmra.mxu0 %vm256_vm2, %v3076_v63 }
  0x57   : > { %2520 = vmatmul.mubr.msk.bf16.gmra.mxu1 %vm256_vm2, %v219_v0  ;;  %2557 = vmatprep.mubr.msk.bf16.mxu0 %vm2892_vm1, %v2891_v1  ;;  %v924_v0 = vpack.c.bf16 %v2158_v61, %v2157_v60  ;;  %v2184_v60 = vld [vmem:[%s2967_s28 + $0x8c] sm:$0xff] }
  0x58   : > { %2523 = vmatprep.mubr.msk.bf16.mxu1 %vm2892_vm1, %v2891_v1 }
  0x5e   : > { %2558 = vmatmul.mubr.msk.bf16.gmra.mxu0 %vm256_vm2, %v3089_v6 }
  0x5f   : > { %2524 = vmatmul.mubr.msk.bf16.gmra.mxu1 %vm256_vm2, %v220_v7  ;;  %2561 = vmatprep.mubr.msk.bf16.mxu0 %vm2892_vm1, %v2891_v1  ;;  %v2271_v7 = vld [vmem:[%s3668_s1 + $0x20] sm:$0xf] }
  0x60   : > { %2527 = vmatprep.mubr.msk.bf16.mxu1 %vm2892_vm1, %v2891_v1  ;;  %v1691_v9 = vsel %vm284_vm0, %v2271_v7, 0 }
  0x66   : > { %2562 = vmatmul.mubr.msk.bf16.gmra.mxu0 %vm256_vm2, %v3102_v12 }
  0x67   : > { %2528 = vmatmul.mubr.msk.bf16.gmra.mxu1 %vm256_vm2, %v221_v13  ;;  %2565 = vmatprep.mubr.msk.bf16.mxu0 %vm2892_vm1, %v2891_v1 }
  0x68   : > { %2531 = vmatprep.mubr.msk.bf16.mxu1 %vm2892_vm1, %v2891_v1 }
  0x6e   : > { %2566 = vmatmul.mubr.msk.bf16.gmra.mxu0 %vm256_vm2, %v3115_v18 }
  0x6f   : > { %2532 = vmatmul.mubr.msk.bf16.gmra.mxu1 %vm256_vm2, %v222_v19  ;;  %2569 = vmatprep.mubr.msk.bf16.mxu0 %vm2892_vm1, %v2891_v1 }
  0x70   : > { %2535 = vmatprep.mubr.msk.bf16.mxu1 %vm2892_vm1, %v2891_v1 }
  0x76   : > { %2570 = vmatmul.mubr.msk.bf16.gmra.mxu0 %vm256_vm2, %v555_v24 }
  0x77   : > { %2536 = vmatmul.mubr.msk.bf16.gmra.mxu1 %vm256_vm2, %v223_v25  ;;  %2573 = vmatprep.mubr.msk.bf16.mxu0 %vm2892_vm1, %v2891_v1 }
  0x78   : > { %2579 = vmatprep.mubr.msk.bf16.mxu1 %vm2892_vm1, %v2891_v1 }
  0x7e   : > { %2574 = vmatmul.mubr.msk.bf16.gmra.mxu0 %vm256_vm2, %v556_v28 }
  0x7f   : > { %2580 = vmatmul.mubr.msk.bf16.vlgmr.msra.gmra.mxu1 %vm256_vm2, %v3050_v51  ;;  %2617 = vmatprep.mubr.msk.bf16.mxu0 %vm2892_vm1, %v2891_v1  ;;  %v2153_v51 = vld [vmem:[%s2967_s28 + $0x73] sm:$0xff] }
  0x80   : > { %2654 = vmatpush3.bf16.msra.mxu1 %v1139_v30  ;;  %2583 = vmatprep.mubr.msk.bf16.mxu1 %vm2892_vm1, %v2891_v1  ;;  %v922_v53 = vpack.c.bf16 %v2154_v52, %v2153_v51 }
  0x81   : > { %2729 = vmatprep.subr.bf16.mxu1 %v2891_v1 }
  0x86   : > { %2618 = vmatmul.mubr.msk.bf16.vlgmr.msra.gmra.mxu0 %vm256_vm2, %v916_v34 }
  0x87   : > { %2584 = vmatmul.mubr.msk.bf16.gmra.mxu1 %vm256_vm2, %v3063_v57  ;;  %2692 = vmatpush3.bf16.msra.mxu0 %v1323_v35  ;;  %v2130_v57 = vld [vmem:[%s2967_s28 + $0x9a] sm:$0xff] }
  0x88   : > { %2587 = vmatprep.mubr.msk.bf16.mxu1 %vm2892_vm1, %v2891_v1  ;;  %2621 = vmatprep.mubr.msk.bf16.mxu0 %vm2892_vm1, %v2891_v1  ;;  %v740_v59 = vpack.c.bf16 %v2130_v57, %v2129_v56 }
  0x89   : > { %2767 = vmatprep.subr.bf16.mxu0 %v2891_v1 }
  0x8e   : > { %2622 = vmatmul.mubr.msk.bf16.gmra.mxu0 %vm256_vm2, %v917_v38  ;;  %v2180_v38 = vld [vmem:[%s2967_s28 + $0x6c] sm:$0xff] }
  0x8f   : > { %2588 = vmatmul.mubr.msk.bf16.gmra.mxu1 %vm256_vm2, %v3076_v63  ;;  %2625 = vmatprep.mubr.msk.bf16.mxu0 %vm2892_vm1, %v2891_v1  ;;  %v2170_v63 = vld [vmem:[%s2967_s28 + $0x1c] sm:$0xff]  ;;  %v1105_v42 = vpack.c.bf16 %v2180_v38, %v2179_v37 }
  0x90   : > { %2591 = vmatprep.mubr.msk.bf16.mxu1 %vm2892_vm1, %v2891_v1  ;;  %v1100_v3 = vpack.c.bf16 %v2170_v63, %v2169_v62 }
  0x96   : > { %2626 = vmatmul.mubr.msk.bf16.gmra.mxu0 %vm256_vm2, %v918_v41 }
  0x97   : > { %2592 = vmatmul.mubr.msk.bf16.gmra.mxu1 %vm256_vm2, %v3089_v6  ;;  %2629 = vmatprep.mubr.msk.bf16.mxu0 %vm2892_vm1, %v2891_v1  ;;  %v2172_v6 = vld [vmem:[%s2967_s28 + $0x2c] sm:$0xff] }
  0x98   : > { %2595 = vmatprep.mubr.msk.bf16.mxu1 %vm2892_vm1, %v2891_v1  ;;  %v1101_v8 = vpack.c.bf16 %v2172_v6, %v2171_v5 }
  0x9e   : > { %2630 = vmatmul.mubr.msk.bf16.gmra.mxu0 %vm256_vm2, %v919_v44 }
  0x9f   : > { %2596 = vmatmul.mubr.msk.bf16.gmra.mxu1 %vm256_vm2, %v3102_v12  ;;  %2633 = vmatprep.mubr.msk.bf16.mxu0 %vm2892_vm1, %v2891_v1  ;;  %v1102_v12 = vpack.c.bf16 %v2174_v11, %v2173_v10  ;;  %v2185_v10 = vld [vmem:[%s2967_s28 + $0x94] sm:$0xff]  ;;  %v2186_v11 = vld [vmem:[%s2967_s28 + $0x9c] sm:$0xff] }
  0xa0   : > { %2599 = vmatprep.mubr.msk.bf16.mxu1 %vm2892_vm1, %v2891_v1 }
  0xa6   : > { %2634 = vmatmul.mubr.msk.bf16.gmra.mxu0 %vm256_vm2, %v920_v47 }
  0xa7   : > { %2600 = vmatmul.mubr.msk.bf16.gmra.mxu1 %vm256_vm2, %v3115_v18  ;;  %2637 = vmatprep.mubr.msk.bf16.mxu0 %vm2892_vm1, %v2891_v1 }
  0xa8   : > { %2603 = vmatprep.mubr.msk.bf16.mxu1 %vm2892_vm1, %v2891_v1 }
  0xae   : > { %2638 = vmatmul.mubr.msk.bf16.gmra.mxu0 %vm256_vm2, %v921_v50 }
  0xaf   : > { %2604 = vmatmul.mubr.msk.bf16.gmra.mxu1 %vm256_vm2, %v555_v24  ;;  %2641 = vmatprep.mubr.msk.bf16.mxu0 %vm2892_vm1, %v2891_v1 }
  0xb0   : > { %2607 = vmatprep.mubr.msk.bf16.mxu1 %vm2892_vm1, %v2891_v1 }
  0xb6   : > { %2642 = vmatmul.mubr.msk.bf16.gmra.mxu0 %vm256_vm2, %v922_v53  ;;  %v1106_v53 = vpack.c.bf16 %v2182_v49, %v2181_v48 }
  0xb7   : > { %2608 = vmatmul.mubr.msk.bf16.gmra.mxu1 %vm256_vm2, %v556_v28  ;;  %2645 = vmatprep.mubr.msk.bf16.mxu0 %vm2892_vm1, %v2891_v1 }
  0xb8   : > { %2611 = vmatprep.mubr.msk.bf16.mxu1 %vm2892_vm1, %v2891_v1 }
  0xbe   : > { %2646 = vmatmul.mubr.msk.bf16.gmra.mxu0 %vm256_vm2, %v923_v58 }
  0xbf   : > { %2612 = vmatmul.mubr.msk.bf16.gmra.mxu1 %vm256_vm2, %v740_v59  ;;  %2649 = vmatprep.mubr.msk.bf16.mxu0 %vm2892_vm1, %v2891_v1  ;;  %v2183_v59 = vld [vmem:[%s2967_s28 + $0x84] sm:$0xff] }
  0xc0   : > { %2655 = vmatprep.mubr.msk.bf16.mxu1 %vm2892_vm1, %v2891_v1  ;;  %v1107_v2 = vpack.c.bf16 %v2184_v60, %v2183_v59  ;;  %v2228_v59 = vld [vmem:[%s2967_s28 + $0x3d] sm:$0xff] }
  0xc6   : > { %2650 = vmatmul.mubr.msk.bf16.gmra.mxu0 %vm256_vm2, %v924_v0 }
  0xc7   : > { %2656 = vmatmul.mubr.msk.bf16.vlgmr.msra.gmra.mxu1 %vm256_vm2, %v1100_v3  ;;  %2693 = vmatprep.mubr.msk.bf16.mxu0 %vm2892_vm1, %v2891_v1 }
  0xc8   : > { %2730 = vmatpush3.bf16.msra.mxu1 %v1507_v4  ;;  %2659 = vmatprep.mubr.msk.bf16.mxu1 %vm2892_vm1, %v2891_v1 }
  0xce   : > { %2694 = vmatmul.mubr.msk.bf16.vlgmr.msra.gmra.mxu0 %vm256_vm2, %v1101_v8 }
  0xcf   : > { %2660 = vmatmul.mubr.msk.bf16.gmra.mxu1 %vm256_vm2, %v1101_v8  ;;  %2768 = vmatpush3.bf16.msra.mxu0 %v1691_v9 }
  0xd0   : > { %2663 = vmatprep.mubr.msk.bf16.mxu1 %vm2892_vm1, %v2891_v1  ;;  %2697 = vmatprep.mubr.msk.bf16.mxu0 %vm2892_vm1, %v2891_v1 }
  0xd6   : > { %v3252_v13 = vpop.f32.mrf.mxu0  ;;  %2698 = vmatmul.mubr.msk.bf16.gmra.mxu0 %vm256_vm2, %v1102_v12 }
  0xd7   : > { %v3255_v14 = vpop.f32.mrf.mxu1  ;;  %2664 = vmatmul.mubr.msk.bf16.gmra.mxu1 %vm256_vm2, %v1102_v12  ;;  %2701 = vmatprep.mubr.msk.bf16.mxu0 %vm2892_vm1, %v2891_v1 }
  0xd8   : > { %v2467_v17 = vpop.f32.mrf.mxu0  ;;  %2667 = vmatprep.mubr.msk.bf16.mxu1 %vm2892_vm1, %v2891_v1 }
  0xd9   : > { %v2487_v18 = vpop.f32.mrf.mxu1  ;;  %v1108_v17 = vpack.c.bf16 %v2186_v11, %v2185_v10  ;;  %v2255_v10 = vld [vmem:[%s2967_s28 + $0x36] sm:$0xff]  ;;  %v2256_v11 = vld [vmem:[%s2967_s28 + $0x3e] sm:$0xff] }
  0xda   : > { %v3264_v19 = vpop.f32.mrf.mxu0 }
  0xdb   : > { %v3266_v21 = vpop.f32.mrf.mxu1 }
  0xdc   : > { %v2468_v22 = vpop.f32.mrf.mxu0 }
  0xdd   : > { %v2488_v23 = vpop.f32.mrf.mxu1 }
  0xde   : > { %v3268_v24 = vpop.f32.mrf.mxu0  ;;  %2702 = vmatmul.mubr.msk.bf16.gmra.mxu0 %vm256_vm2, %v1103_v20 }
  0xdf   : > { %v3271_v25 = vpop.f32.mrf.mxu1  ;;  %2668 = vmatmul.mubr.msk.bf16.gmra.mxu1 %vm256_vm2, %v1103_v20  ;;  %2705 = vmatprep.mubr.msk.bf16.mxu0 %vm2892_vm1, %v2891_v1 }
  0xe0   : > { %v2471_v28 = vpop.f32.mrf.mxu0  ;;  %2671 = vmatprep.mubr.msk.bf16.mxu1 %vm2892_vm1, %v2891_v1 }
  0xe1   : > { %v2491_v29 = vpop.f32.mrf.mxu1  ;;  %v2213_v28 = vld [vmem:[%s2967_s28 + $0xa4] sm:$0xff] }
  0xe2   : > { %v3280_v30 = vpop.f32.mrf.mxu0  ;;  %v2214_v29 = vld [vmem:[%s2967_s28 + $0xac] sm:$0xff] }
  0xe3   : > { %v3282_v32 = vpop.f32.mrf.mxu1 }
  0xe4   : > { %v2472_v33 = vpop.f32.mrf.mxu0 }
  0xe5   : > { %v2492_v34 = vpop.f32.mrf.mxu1 }
  0xe6   : > { %v3284_v35 = vpop.f32.mrf.mxu0  ;;  %2706 = vmatmul.mubr.msk.bf16.gmra.mxu0 %vm256_vm2, %v1104_v31  ;;  %v2226_v34 = vld [vmem:[%s2967_s28 + $0x2d] sm:$0xff] }
  0xe7   : > { %v3287_v36 = vpop.f32.mrf.mxu1  ;;  %2672 = vmatmul.mubr.msk.bf16.gmra.mxu1 %vm256_vm2, %v1104_v31  ;;  %2709 = vmatprep.mubr.msk.bf16.mxu0 %vm2892_vm1, %v2891_v1 }
  0xe8   : > { %v2475_v39 = vpop.f32.mrf.mxu0  ;;  %2675 = vmatprep.mubr.msk.bf16.mxu1 %vm2892_vm1, %v2891_v1 }
  0xe9   : > { %v2495_v40 = vpop.f32.mrf.mxu1  ;;  %v1292_v39 = vpack.c.bf16 %v2214_v29, %v2213_v28 }
  0xea   : > { %v3296_v41 = vpop.f32.mrf.mxu0 }
  0xeb   : > { %v3298_v43 = vpop.f32.mrf.mxu1 }
  0xec   : > { %v2476_v44 = vpop.f32.mrf.mxu0 }
  0xed   : > { %v2496_v45 = vpop.f32.mrf.mxu1 }
  0xee   : > { %v3300_v46 = vpop.f32.mrf.mxu0  ;;  %2710 = vmatmul.mubr.msk.bf16.gmra.mxu0 %vm256_vm2, %v1105_v42 }
  0xef   : > { %v3303_v47 = vpop.f32.mrf.mxu1  ;;  %2676 = vmatmul.mubr.msk.bf16.gmra.mxu1 %vm256_vm2, %v1105_v42  ;;  %2713 = vmatprep.mubr.msk.bf16.mxu0 %vm2892_vm1, %v2891_v1 }
  0xf0   : > { %v2479_v50 = vpop.f32.mrf.mxu0  ;;  %2679 = vmatprep.mubr.msk.bf16.mxu1 %vm2892_vm1, %v2891_v1 }
  0xf1   : > { %v2499_v51 = vpop.f32.mrf.mxu1 }
  0xf2   : > { %v3312_v52 = vpop.f32.mrf.mxu0 }
  0xf3   : > { %v3314_v54 = vpop.f32.mrf.mxu1 }
  0xf4   : > { %v2480_v55 = vpop.f32.mrf.mxu0 }
  0xf5   : > { %v2500_v56 = vpop.f32.mrf.mxu1  ;;  %v2254_v55 = vld [vmem:[%s2967_s28 + $0x2e] sm:$0xff] }
  0xf6   : > { %v3316_v57 = vpop.f32.mrf.mxu0  ;;  %2714 = vmatmul.mubr.msk.bf16.gmra.mxu0 %vm256_vm2, %v1106_v53 }
  0xf7   : > { %v457_v58 = vpop.f32.mrf.mxu1  ;;  %2680 = vmatmul.mubr.msk.bf16.gmra.mxu1 %vm256_vm2, %v1106_v53  ;;  %2717 = vmatprep.mubr.msk.bf16.mxu0 %vm2892_vm1, %v2891_v1  ;;  %v2253_v53 = vld [vmem:[%s2967_s28 + $0x26] sm:$0xff] }
  0xf8   : > { %v458_v61 = vadd.f32 %v457_v58, %v3252_v13  ;;  %v2483_v62 = vpop.f32.mrf.mxu0  ;;  %2683 = vmatprep.mubr.msk.bf16.mxu1 %vm2892_vm1, %v2891_v1 }
  0xf9   : > { %v2505_v63 = vpop.f32.mrf.mxu1  ;;  %v1652_v62 = vpack.c.bf16 %v2254_v55, %v2253_v53 }
  0xfa   : > { %v3327_v0 = vpop.f32.mrf.mxu0 }
  0xfb   : > { %v460_v3 = vpop.f32.mrf.mxu1 }
  0xfc   : > { %v461_v4 = vadd.f32 %v460_v3, %v3264_v19  ;;  %v2484_v5 = vpop.f32.mrf.mxu0 }
  0xfd   : > { %v2506_v6 = vpop.f32.mrf.mxu1 }
  0xfe   : > { %v623_v7 = vpop.f32.mrf.mxu0  ;;  %2718 = vmatmul.mubr.msk.bf16.gmra.mxu0 %vm256_vm2, %v1107_v2 }
  0xff   : > { %v465_v8 = vpop.f32.mrf.mxu1  ;;  %v3331_v9 = vadd.f32 %v623_v7, %v458_v61  ;;  %2684 = vmatmul.mubr.msk.bf16.gmra.mxu1 %vm256_vm2, %v1107_v2  ;;  %2721 = vmatprep.mubr.msk.bf16.mxu0 %vm2892_vm1, %v2891_v1 }
 0x100   : > { %v466_v12 = vadd.f32 %v465_v8, %v3268_v24  ;;  %v2543_v13 = vpop.f32.mrf.mxu0  ;;  %2687 = vmatprep.mubr.msk.bf16.mxu1 %vm2892_vm1, %v2891_v1 }
 0x101   : > { %v2509_v15 = vpop.f32.mrf.mxu1 }
 0x102   : > { %v626_v16 = vpop.f32.mrf.mxu0  ;;  %v2230_v15 = vld [vmem:[%s2967_s28 + $0x4d] sm:$0xff] }
 0x103   : > { %v468_v18 = vpop.f32.mrf.mxu1  ;;  %v3341_v19 = vadd.f32 %v626_v16, %v461_v4 }
 0x104   : > { %v469_v20 = vadd.f32 %v468_v18, %v3280_v30  ;;  %v2544_v22 = vpop.f32.mrf.mxu0  ;;  %v2225_v30 = vld [vmem:[%s2967_s28 + $0x25] sm:$0xff]  ;;  %v1653_v18 = vpack.c.bf16 %v2256_v11, %v2255_v10 }
 0x105   : > { %v2510_v23 = vpop.f32.mrf.mxu1  ;;  %v1468_v44 = vpack.c.bf16 %v2226_v34, %v2225_v30  ;;  %v2258_v30 = vld [vmem:[%s2967_s28 + $0x4e] sm:$0xff] }
 0x106   : > { %v631_v26 = vpop.f32.mrf.mxu0  ;;  %2722 = vmatmul.mubr.msk.bf16.gmra.mxu0 %vm256_vm2, %v1108_v17 }
 0x107   : > { %v473_v24 = vpop.f32.mrf.mxu1  ;;  %v3345_v27 = vadd.f32 %v631_v26, %v466_v12  ;;  %2688 = vmatmul.mubr.msk.bf16.gmra.mxu1 %vm256_vm2, %v1108_v17  ;;  %2725 = vmatprep.mubr.msk.bf16.mxu0 %vm2892_vm1, %v2891_v1 }
 0x108   : > { %v474_v31 = vadd.f32 %v473_v24, %v3284_v35  ;;  %v2547_v33 = vpop.f32.mrf.mxu0  ;;  %2731 = vmatprep.mubr.msk.bf16.mxu1 %vm2892_vm1, %v2891_v1 }
 0x109   : > { %v2513_v37 = vpop.f32.mrf.mxu1  ;;  %v2257_v33 = vld [vmem:[%s2967_s28 + $0x46] sm:$0xff] }
 0x10a   : > { %v634_v38 = vpop.f32.mrf.mxu0  ;;  %v2232_v37 = vld [vmem:[%s2967_s28 + $0x5d] sm:$0xff] }
 0x10b   : > { %v476_v40 = vpop.f32.mrf.mxu1  ;;  %v3357_v42 = vadd.f32 %v634_v38, %v469_v20 }
 0x10c   : > { %v477_v45 = vadd.f32 %v476_v40, %v3296_v41  ;;  %v2548_v35 = vpop.f32.mrf.mxu0  ;;  %v2227_v41 = vld [vmem:[%s2967_s28 + $0x35] sm:$0xff]  ;;  %v1654_v40 = vpack.c.bf16 %v2258_v30, %v2257_v33 }
 0x10d   : > { %v2514_v48 = vpop.f32.mrf.mxu1  ;;  %v1469_v3 = vpack.c.bf16 %v2228_v59, %v2227_v41  ;;  %v2260_v41 = vld [vmem:[%s2967_s28 + $0x5e] sm:$0xff] }
 0x10e   : > { %v639_v49 = vpop.f32.mrf.mxu0  ;;  %2726 = vmatmul.mubr.msk.bf16.gmra.mxu0 %vm256_vm2, %v1292_v39 }
 0x10f   : > { %v481_v50 = vpop.f32.mrf.mxu1  ;;  %v3361_v51 = vadd.f32 %v639_v49, %v474_v31  ;;  %2732 = vmatmul.mubr.msk.bf16.vlgmr.msra.gmra.mxu1 %vm256_vm2, %v1468_v44  ;;  %2769 = vmatprep.mubr.msk.bf16.mxu0 %vm2892_vm1, %v2891_v1 }
 0x110   : > { %v482_v56 = vadd.f32 %v481_v50, %v3300_v46  ;;  %v2551_v58 = vpop.f32.mrf.mxu0  ;;  %2735 = vmatprep.mubr.msk.bf16.mxu1 %vm2892_vm1, %v2891_v1 }
 0x111   : > { %v2517_v60 = vpop.f32.mrf.mxu1  ;;  %v2259_v58 = vld [vmem:[%s2967_s28 + $0x56] sm:$0xff] }
 0x112   : > { %v642_v61 = vpop.f32.mrf.mxu0  ;;  %v2233_v60 = vld [vmem:[%s2967_s28 + $0x65] sm:$0xff] }
 0x113   : > { %v484_v63 = vpop.f32.mrf.mxu1  ;;  %v3373_v2 = vadd.f32 %v642_v61, %v477_v45 }
 0x114   : > { %v485_v4 = vadd.f32 %v484_v63, %v3312_v52  ;;  %v2552_v46 = vpop.f32.mrf.mxu0  ;;  %v2229_v52 = vld [vmem:[%s2967_s28 + $0x45] sm:$0xff] }
 0x115   : > { %v2518_v5 = vpop.f32.mrf.mxu1  ;;  %v1470_v23 = vpack.c.bf16 %v2230_v15, %v2229_v52  ;;  %v2262_v52 = vld [vmem:[%s2967_s28 + $0x6e] sm:$0xff] }
 0x116   : > { %v647_v6 = vpop.f32.mrf.mxu0  ;;  %2770 = vmatmul.mubr.msk.bf16.vlgmr.msra.gmra.mxu0 %vm256_vm2, %v1652_v62 }
 0x117   : > { %v489_v7 = vpop.f32.mrf.mxu1  ;;  %v3377_v8 = vadd.f32 %v647_v6, %v482_v56  ;;  %2736 = vmatmul.mubr.msk.bf16.gmra.mxu1 %vm256_vm2, %v1469_v3  ;;  %2773 = vmatprep.mubr.msk.bf16.mxu0 %vm2892_vm1, %v2891_v1  ;;  %v1655_v3 = vpack.c.bf16 %v2260_v41, %v2259_v58 }
 0x118   : > { %v490_v12 = vadd.f32 %v489_v7, %v3316_v57  ;;  %v2555_v13 = vpop.f32.mrf.mxu0  ;;  %2739 = vmatprep.mubr.msk.bf16.mxu1 %vm2892_vm1, %v2891_v1 }
 0x119   : > { %v2521_v16 = vpop.f32.mrf.mxu1  ;;  %v2261_v13 = vld [vmem:[%s2967_s28 + $0x66] sm:$0xff] }
 0x11a   : > { %v650_v17 = vpop.f32.mrf.mxu0  ;;  %v2235_v16 = vld [vmem:[%s2967_s28 + $0x75] sm:$0xff] }
 0x11b   : > { %v492_v20 = vpop.f32.mrf.mxu1  ;;  %v3389_v22 = vadd.f32 %v650_v17, %v485_v4 }
 0x11c   : > { %v493_v26 = vadd.f32 %v492_v20, %v3327_v0  ;;  %v2556_v57 = vpop.f32.mrf.mxu0  ;;  %v2231_v0 = vld [vmem:[%s2967_s28 + $0x55] sm:$0xff] }
 0x11d   : > { %v2522_v24 = vpop.f32.mrf.mxu1  ;;  %v1471_v35 = vpack.c.bf16 %v2232_v37, %v2231_v0  ;;  %v2263_v0 = vld [vmem:[%s2967_s28 + $0x76] sm:$0xff]  ;;  %v2264_v37 = vld [vmem:[%s2967_s28 + $0x7e] sm:$0xff] }
 0x11e   : > { %v655_v28 = vpop.f32.mrf.mxu0  ;;  %2774 = vmatmul.mubr.msk.bf16.gmra.mxu0 %vm256_vm2, %v1653_v18 }
 0x11f   : > { %v497_v29 = vpop.f32.mrf.mxu1  ;;  %v3393_v31 = vadd.f32 %v655_v28, %v490_v12  ;;  %2740 = vmatmul.mubr.msk.bf16.gmra.mxu1 %vm256_vm2, %v1470_v23  ;;  %2777 = vmatprep.mubr.msk.bf16.mxu0 %vm2892_vm1, %v2891_v1  ;;  %v1656_v23 = vpack.c.bf16 %v2262_v52, %v2261_v13 }
 0x120   : > { %v2559_v34 = vpop.f32.mrf.mxu0  ;;  %2743 = vmatprep.mubr.msk.bf16.mxu1 %vm2892_vm1, %v2891_v1  ;;  %v498_v49 = vadd.f32 %v497_v29, %v3255_v14  ;;  %v2234_v14 = vld [vmem:[%s2967_s28 + $0x6d] sm:$0xff] }
 0x121   : > { %v2525_v38 = vpop.f32.mrf.mxu1  ;;  %v1472_v5 = vpack.c.bf16 %v2234_v14, %v2233_v60  ;;  %v2265_v14 = vld [vmem:[%s2967_s28 + $0x86] sm:$0xff] }
 0x122   : > { %v658_v39 = vpop.f32.mrf.mxu0 }
 0x123   : > { %v500_v44 = vpop.f32.mrf.mxu1  ;;  %v3404_v45 = vadd.f32 %v658_v39, %v493_v26  ;;  %v2237_v39 = vld [vmem:[%s2967_s28 + $0x85] sm:$0xff] }
 0x124   : > { %v2560_v48 = vpop.f32.mrf.mxu0  ;;  %v501_v61 = vadd.f32 %v500_v44, %v3266_v21 }
 0x125   : > { %v2526_v50 = vpop.f32.mrf.mxu1  ;;  %v1657_v48 = vpack.c.bf16 %v2264_v37, %v2263_v0 }
 0x126   : > { %v663_v53 = vpop.f32.mrf.mxu0  ;;  %2778 = vmatmul.mubr.msk.bf16.gmra.mxu0 %vm256_vm2, %v1654_v40 }
 0x127   : > { %v505_v55 = vpop.f32.mrf.mxu1  ;;  %v3408_v56 = vadd.f32 %v663_v53, %v498_v49  ;;  %2744 = vmatmul.mubr.msk.bf16.gmra.mxu1 %vm256_vm2, %v1471_v35  ;;  %2781 = vmatprep.mubr.msk.bf16.mxu0 %vm2892_vm1, %v2891_v1 }
 0x128   : > { %v2563_v59 = vpop.f32.mrf.mxu0  ;;  %2747 = vmatprep.mubr.msk.bf16.mxu1 %vm2892_vm1, %v2891_v1  ;;  %v506_v7 = vadd.f32 %v505_v55, %v3271_v25  ;;  %v2236_v25 = vld [vmem:[%s2967_s28 + $0x7d] sm:$0xff] }
 0x129   : > { %v2529_v62 = vpop.f32.mrf.mxu1  ;;  %v1473_v24 = vpack.c.bf16 %v2236_v25, %v2235_v16  ;;  %v2267_v25 = vld [vmem:[%s2967_s28 + $0x96] sm:$0xff] }
 0x12a   : > { %v666_v63 = vpop.f32.mrf.mxu0 }
 0x12b   : > { %v508_v4 = vpop.f32.mrf.mxu1  ;;  %v3420_v46 = vadd.f32 %v666_v63, %v501_v61  ;;  %v2266_v61 = vld [vmem:[%s2967_s28 + $0x8e] sm:$0xff] }
 0x12c   : > { %v2564_v6 = vpop.f32.mrf.mxu0  ;;  %v509_v17 = vadd.f32 %v508_v4, %v3282_v32 }
 0x12d   : > { %v2530_v10 = vpop.f32.mrf.mxu1 }
 0x12e   : > { %v671_v11 = vpop.f32.mrf.mxu0  ;;  %2782 = vmatmul.mubr.msk.bf16.gmra.mxu0 %vm256_vm2, %v1655_v3  ;;  %v2240_v3 = vld [vmem:[%s2967_s28 + $0x9d] sm:$0xff] }
 0x12f   : > { %v513_v12 = vpop.f32.mrf.mxu1  ;;  %v3424_v21 = vadd.f32 %v671_v11, %v506_v7  ;;  %2748 = vmatmul.mubr.msk.bf16.gmra.mxu1 %vm256_vm2, %v1472_v5  ;;  %2785 = vmatprep.mubr.msk.bf16.mxu0 %vm2892_vm1, %v2891_v1  ;;  %v1658_v7 = vpack.c.bf16 %v2266_v61, %v2265_v14 }
 0x130   : > { %v2567_v15 = vpop.f32.mrf.mxu0  ;;  %2751 = vmatprep.mubr.msk.bf16.mxu1 %vm2892_vm1, %v2891_v1  ;;  %v514_v29 = vadd.f32 %v513_v12, %v3287_v36  ;;  %v2238_v36 = vld [vmem:[%s2967_s28 + $0x8d] sm:$0xff] }
 0x131   : > { %v2533_v18 = vpop.f32.mrf.mxu1  ;;  %v1474_v53 = vpack.c.bf16 %v2238_v36, %v2237_v39  ;;  %v2269_v36 = vld [vmem:[%s2967_s28 + $0xa6] sm:$0xff] }
 0x132   : > { %v674_v20 = vpop.f32.mrf.mxu0 }
 0x133   : > { %v516_v26 = vpop.f32.mrf.mxu1  ;;  %v3436_v57 = vadd.f32 %v674_v20, %v509_v17  ;;  %v2268_v17 = vld [vmem:[%s2967_s28 + $0x9e] sm:$0xff] }
 0x134   : > { %v2568_v28 = vpop.f32.mrf.mxu0  ;;  %v517_v40 = vadd.f32 %v516_v26, %v3298_v43 }
 0x135   : > { %v2534_v33 = vpop.f32.mrf.mxu1  ;;  %v1659_v28 = vpack.c.bf16 %v2268_v17, %v2267_v25 }
 0x136   : > { %v679_v30 = vpop.f32.mrf.mxu0  ;;  %2786 = vmatmul.mubr.msk.bf16.gmra.mxu0 %vm256_vm2, %v1656_v23  ;;  %v2242_v23 = vld [vmem:[%s2967_s28 + $0xad] sm:$0xff] }
 0x137   : > { %v521_v34 = vpop.f32.mrf.mxu1  ;;  %v3440_v32 = vadd.f32 %v679_v30, %v514_v29  ;;  %2752 = vmatmul.mubr.msk.bf16.gmra.mxu1 %vm256_vm2, %v1473_v24  ;;  %2789 = vmatprep.mubr.msk.bf16.mxu0 %vm2892_vm1, %v2891_v1 }
 0x138   : > { %v2571_v38 = vpop.f32.mrf.mxu0  ;;  %2755 = vmatprep.mubr.msk.bf16.mxu1 %vm2892_vm1, %v2891_v1  ;;  %v522_v58 = vadd.f32 %v521_v34, %v3303_v47  ;;  %v2239_v47 = vld [vmem:[%s2967_s28 + $0x95] sm:$0xff] }
 0x139   : > { %v2537_v44 = vpop.f32.mrf.mxu1  ;;  %v1475_v12 = vpack.c.bf16 %v2240_v3, %v2239_v47 }
 0x13a   : > { %v682_v35 = vpop.f32.mrf.mxu0 }
 0x13b   : > { %v524_v49 = vpop.f32.mrf.mxu1  ;;  %v3452_v50 = vadd.f32 %v682_v35, %v517_v40  ;;  %v2270_v40 = vld [vmem:[%s2967_s28 + $0xae] sm:$0xff] }
 0x13c   : > { %v2572_v55 = vpop.f32.mrf.mxu0  ;;  %v525_v4 = vadd.f32 %v524_v49, %v3314_v54  ;;  %v1660_v49 = vpack.c.bf16 %v2270_v40, %v2269_v36 }
 0x13d   : > { %v2538_v41 = vpop.f32.mrf.mxu1 }
 0x13e   : > { %v687_v59 = vpop.f32.mrf.mxu0  ;;  %2790 = vmatmul.mubr.msk.bf16.gmra.mxu0 %vm256_vm2, %v1657_v48 }
 0x13f   : > { %v3456_v60 = vadd.f32 %v687_v59, %v522_v58  ;;  %v807_v43 = vpop.f32.mrf.mxu1  ;;  %2756 = vmatmul.mubr.msk.bf16.gmra.mxu1 %vm256_vm2, %v1474_v53  ;;  %2793 = vmatprep.mubr.msk.bf16.mxu0 %vm2892_vm1, %v2891_v1 }
 0x140   : > { %v878_v62 = vadd.f32 %v807_v43, %v3331_v9  ;;  %v2575_v63 = vpop.f32.mrf.mxu0  ;;  %2759 = vmatprep.mubr.msk.bf16.mxu1 %vm2892_vm1, %v2891_v1 }
 0x141   : > { %v2581_v5 = vpop.f32.mrf.mxu1 }
 0x142   : > { %v690_v6 = vpop.f32.mrf.mxu0 }
 0x143   : > { %v3469_v10 = vadd.f32 %v690_v6, %v525_v4  ;;  %v810_v11 = vpop.f32.mrf.mxu1 }
 0x144   : > { %v879_v9 = vadd.f32 %v810_v11, %v3341_v19  ;;  %v2576_v13 = vpop.f32.mrf.mxu0  ;;  %v2241_v19 = vld [vmem:[%s2967_s28 + $0xa5] sm:$0xff] }
 0x145   : > { %v2582_v52 = vpop.f32.mrf.mxu1  ;;  %v1476_v30 = vpack.c.bf16 %v2242_v23, %v2241_v19 }
 0x146   : > { %v991_v15 = vpop.f32.mrf.mxu0  ;;  %2794 = vmatmul.mubr.msk.bf16.gmra.mxu0 %vm256_vm2, %v1658_v7 }
 0x147   : > { %v815_v16 = vpop.f32.mrf.mxu1  ;;  %v3473_v54 = vadd.f32 %v991_v15, %v878_v62  ;;  %2760 = vmatmul.mubr.msk.bf16.gmra.mxu1 %vm256_vm2, %v1475_v12  ;;  %2797 = vmatprep.mubr.msk.bf16.mxu0 %vm2892_vm1, %v2891_v1 }
 0x148   : > { %v880_v18 = vadd.f32 %v815_v16, %v3345_v27  ;;  %v2619_v20 = vpop.f32.mrf.mxu0  ;;  %2763 = vmatprep.mubr.msk.bf16.mxu1 %vm2892_vm1, %v2891_v1 }
 0x149   : > { %v2585_v26 = vpop.f32.mrf.mxu1 }
 0x14a   : > { %v994_v24 = vpop.f32.mrf.mxu0 }
 0x14b   : > { %v818_v29 = vpop.f32.mrf.mxu1  ;;  %v3485_v33 = vadd.f32 %v994_v24, %v879_v9 }
 0x14c   : > { %v881_v34 = vadd.f32 %v818_v29, %v3357_v42  ;;  %v2620_v0 = vpop.f32.mrf.mxu0 }
 0x14d   : > { %v2586_v37 = vpop.f32.mrf.mxu1 }
 0x14e   : > { %v999_v27 = vpop.f32.mrf.mxu0  ;;  %2798 = vmatmul.mubr.msk.bf16.gmra.mxu0 %vm256_vm2, %v1659_v28 }
 0x14f   : > { %v823_v38 = vpop.f32.mrf.mxu1  ;;  %v3489_v39 = vadd.f32 %v999_v27, %v880_v18  ;;  %2764 = vmatmul.mubr.msk.bf16.gmra.mxu1 %vm256_vm2, %v1476_v30  ;;  %2801 = vmatprep.mubr.msk.bf16.mxu0 %vm2892_vm1, %v2891_v1 }
 0x150   : > { %v882_v44 = vadd.f32 %v823_v38, %v3361_v51  ;;  %v2623_v35 = vpop.f32.mrf.mxu0 }
 0x151   : > { %v2589_v48 = vpop.f32.mrf.mxu1 }
 0x152   : > { %v1002_v42 = vpop.f32.mrf.mxu0 }
 0x153   : > { %v826_v53 = vpop.f32.mrf.mxu1  ;;  %v3497_v55 = vadd.f32 %v1002_v42, %v881_v34 }
 0x154   : > { %v883_v58 = vadd.f32 %v826_v53, %v3373_v2  ;;  %v2624_v41 = vpop.f32.mrf.mxu0 }
 0x155   : > { %v2590_v59 = vpop.f32.mrf.mxu1 }
 0x156   : > { %v1007_v43 = vpop.f32.mrf.mxu0  ;;  %2802 = vmatmul.mubr.msk.bf16.gmra.mxu0 %vm256_vm2, %v1660_v49 }
 0x157   : > { %v831_v14 = vpop.f32.mrf.mxu1  ;;  %v3501_v1 = vadd.f32 %v1007_v43, %v882_v44 }
 0x158   : > { %v884_v61 = vadd.f32 %v831_v14, %v3377_v8  ;;  %v2627_v51 = vpop.f32.mrf.mxu0 }
 0x159   : > { %v2593_v62 = vpop.f32.mrf.mxu1 }
 0x15a   : > { %v1010_v63 = vpop.f32.mrf.mxu0 }
 0x15b   : > { %v834_v47 = vpop.f32.mrf.mxu1  ;;  %v3504_v3 = vadd.f32 %v1010_v63, %v883_v58 }
 0x15c   : > { %v885_v4 = vadd.f32 %v834_v47, %v3389_v22  ;;  %v2628_v5 = vpop.f32.mrf.mxu0 }
 0x15d   : > { %v2594_v2 = vpop.f32.mrf.mxu1 }
 0x15e   : > { %v1015_v6 = vpop.f32.mrf.mxu0 }
 0x15f   : > { %v839_v7 = vpop.f32.mrf.mxu1  ;;  %v3507_v11 = vadd.f32 %v1015_v6, %v884_v61 }
 0x160   : > { %v886_v12 = vadd.f32 %v839_v7, %v3393_v31  ;;  %v2631_v9 = vpop.f32.mrf.mxu0 }
 0x161   : > { %v2597_v13 = vpop.f32.mrf.mxu1 }
 0x162   : > { %v1018_v52 = vpop.f32.mrf.mxu0 }
 0x163   : > { %v842_v8 = vpop.f32.mrf.mxu1  ;;  %v3510_v15 = vadd.f32 %v1018_v52, %v885_v4 }
 0x164   : > { %v887_v16 = vadd.f32 %v842_v8, %v3404_v45  ;;  %v2632_v25 = vpop.f32.mrf.mxu0 }
 0x165   : > { %v2598_v17 = vpop.f32.mrf.mxu1 }
 0x166   : > { %v1023_v18 = vpop.f32.mrf.mxu0 }
 0x167   : > { %v847_v22 = vpop.f32.mrf.mxu1  ;;  %v3513_v20 = vadd.f32 %v1023_v18, %v886_v12 }
 0x168   : > { %v888_v19 = vadd.f32 %v847_v22, %v3408_v56  ;;  %v2635_v23 = vpop.f32.mrf.mxu0 }
 0x169   : > { %v2601_v26 = vpop.f32.mrf.mxu1 }
 0x16a   : > { %v1026_v24 = vpop.f32.mrf.mxu0 }
 0x16b   : > { %v850_v31 = vpop.f32.mrf.mxu1  ;;  %v3516_v28 = vadd.f32 %v1026_v24, %v887_v16 }
 0x16c   : > { %v889_v29 = vadd.f32 %v850_v31, %v3420_v46  ;;  %v2636_v30 = vpop.f32.mrf.mxu0 }
 0x16d   : > { %v2602_v34 = vpop.f32.mrf.mxu1 }
 0x16e   : > { %v1031_v0 = vpop.f32.mrf.mxu0 }
 0x16f   : > { %v855_v45 = vpop.f32.mrf.mxu1  ;;  %v3519_v37 = vadd.f32 %v1031_v0, %v888_v19 }
 0x170   : > { %v890_v27 = vadd.f32 %v855_v45, %v3424_v21  ;;  %v2639_v38 = vpop.f32.mrf.mxu0 }
 0x171   : > { %v2605_v36 = vpop.f32.mrf.mxu1 }
 0x172   : > { %v1034_v40 = vpop.f32.mrf.mxu0 }
 0x173   : > { %v858_v56 = vpop.f32.mrf.mxu1  ;;  %v3522_v44 = vadd.f32 %v1034_v40, %v889_v29 }
 0x174   : > { %v891_v35 = vadd.f32 %v858_v56, %v3436_v57  ;;  %v2640_v48 = vpop.f32.mrf.mxu0 }
 0x175   : > { %v2606_v42 = vpop.f32.mrf.mxu1 }
 0x176   : > { %v1039_v49 = vpop.f32.mrf.mxu0 }
 0x177   : > { %v863_v46 = vpop.f32.mrf.mxu1  ;;  %v3525_v53 = vadd.f32 %v1039_v49, %v890_v27 }
 0x178   : > { %v892_v58 = vadd.f32 %v863_v46, %v3440_v32  ;;  %v2643_v41 = vpop.f32.mrf.mxu0 }
 0x179   : > { %v2609_v59 = vpop.f32.mrf.mxu1 }
 0x17a   : > { %v1042_v43 = vpop.f32.mrf.mxu0 }
 0x17b   : > { %v866_v21 = vpop.f32.mrf.mxu1  ;;  %v3528_v14 = vadd.f32 %v1042_v43, %v891_v35 }
 0x17c   : > { %v893_v61 = vadd.f32 %v866_v21, %v3452_v50  ;;  %v2644_v51 = vpop.f32.mrf.mxu0 }
 0x17d   : > { %v2610_v62 = vpop.f32.mrf.mxu1 }
 0x17e   : > { %v1047_v63 = vpop.f32.mrf.mxu0 }
 0x17f   : > { %v871_v57 = vpop.f32.mrf.mxu1  ;;  %v3531_v47 = vadd.f32 %v1047_v63, %v892_v58 }
 0x180   : > { %v894_v4 = vadd.f32 %v871_v57, %v3456_v60  ;;  %v2647_v5 = vpop.f32.mrf.mxu0 }
 0x181   : > { %v2613_v2 = vpop.f32.mrf.mxu1 }
 0x182   : > { %v1050_v6 = vpop.f32.mrf.mxu0 }
 0x183   : > { %v874_v32 = vpop.f32.mrf.mxu1  ;;  %v3534_v7 = vadd.f32 %v1050_v6, %v893_v61 }
 0x184   : > { %v895_v12 = vadd.f32 %v874_v32, %v3469_v10  ;;  %v2648_v9 = vpop.f32.mrf.mxu0 }
 0x185   : > { %v2614_v13 = vpop.f32.mrf.mxu1 }
 0x186   : > { %v1055_v52 = vpop.f32.mrf.mxu0 }
 0x187   : > { %v3537_v50 = vadd.f32 %v1055_v52, %v894_v4  ;;  %v1175_v8 = vpop.f32.mrf.mxu1 }
 0x188   : > { %v1246_v16 = vadd.f32 %v1175_v8, %v3473_v54  ;;  %v2651_v25 = vpop.f32.mrf.mxu0 }
 0x189   : > { %v2657_v17 = vpop.f32.mrf.mxu1 }
 0x18a   : > { %v1058_v18 = vpop.f32.mrf.mxu0 }
 0x18b   : > { %v3540_v60 = vadd.f32 %v1058_v18, %v895_v12  ;;  %v1178_v22 = vpop.f32.mrf.mxu1 }
 0x18c   : > { %v1247_v19 = vadd.f32 %v1178_v22, %v3485_v33  ;;  %v2652_v23 = vpop.f32.mrf.mxu0 }
 0x18d   : > { %v2658_v26 = vpop.f32.mrf.mxu1 }
 0x18e   : > { %v1359_v24 = vpop.f32.mrf.mxu0 }
 0x18f   : > { %v1183_v10 = vpop.f32.mrf.mxu1  ;;  %v3543_v31 = vadd.f32 %v1359_v24, %v1246_v16 }
 0x190   : > { %v1248_v29 = vadd.f32 %v1183_v10, %v3489_v39  ;;  %v2695_v30 = vpop.f32.mrf.mxu0 }
 0x191   : > { %v2661_v34 = vpop.f32.mrf.mxu1 }
 0x192   : > { %v1362_v0 = vpop.f32.mrf.mxu0 }
 0x193   : > { %v1186_v54 = vpop.f32.mrf.mxu1  ;;  %v3546_v45 = vadd.f32 %v1362_v0, %v1247_v19 }
 0x194   : > { %v1249_v27 = vadd.f32 %v1186_v54, %v3497_v55  ;;  %v2696_v38 = vpop.f32.mrf.mxu0 }
 0x195   : > { %v2662_v36 = vpop.f32.mrf.mxu1 }
 0x196   : > { %v1367_v40 = vpop.f32.mrf.mxu0 }
 0x197   : > { %v1191_v33 = vpop.f32.mrf.mxu1  ;;  %v3549_v56 = vadd.f32 %v1367_v40, %v1248_v29 }
 0x198   : > { %v1250_v35 = vadd.f32 %v1191_v33, %v3501_v1  ;;  %v2699_v48 = vpop.f32.mrf.mxu0 }
 0x199   : > { %v2665_v42 = vpop.f32.mrf.mxu1 }
 0x19a   : > { %v1370_v49 = vpop.f32.mrf.mxu0 }
 0x19b   : > { %v1194_v39 = vpop.f32.mrf.mxu1  ;;  %v3552_v46 = vadd.f32 %v1370_v49, %v1249_v27 }
 0x19c   : > { %v1251_v58 = vadd.f32 %v1194_v39, %v3504_v3  ;;  %v2700_v41 = vpop.f32.mrf.mxu0 }
 0x19d   : > { %v2666_v59 = vpop.f32.mrf.mxu1 }
 0x19e   : > { %v1375_v43 = vpop.f32.mrf.mxu0 }
 0x19f   : > { %v1199_v55 = vpop.f32.mrf.mxu1  ;;  %v3555_v21 = vadd.f32 %v1375_v43, %v1250_v35 }
 0x1a0   : > { %v1252_v61 = vadd.f32 %v1199_v55, %v3507_v11  ;;  %v2703_v51 = vpop.f32.mrf.mxu0 }
 0x1a1   : > { %v2669_v62 = vpop.f32.mrf.mxu1 }
 0x1a2   : > { %v1378_v63 = vpop.f32.mrf.mxu0 }
 0x1a3   : > { %v1202_v1 = vpop.f32.mrf.mxu1  ;;  %v3558_v57 = vadd.f32 %v1378_v63, %v1251_v58 }
 0x1a4   : > { %v1253_v4 = vadd.f32 %v1202_v1, %v3510_v15  ;;  %v2704_v5 = vpop.f32.mrf.mxu0 }
 0x1a5   : > { %v2670_v2 = vpop.f32.mrf.mxu1 }
 0x1a6   : > { %v1383_v6 = vpop.f32.mrf.mxu0 }
 0x1a7   : > { %v1207_v3 = vpop.f32.mrf.mxu1  ;;  %v3561_v32 = vadd.f32 %v1383_v6, %v1252_v61 }
 0x1a8   : > { %v1254_v12 = vadd.f32 %v1207_v3, %v3513_v20  ;;  %v2707_v9 = vpop.f32.mrf.mxu0 }
 0x1a9   : > { %v2673_v13 = vpop.f32.mrf.mxu1 }
 0x1aa   : > { %v1386_v52 = vpop.f32.mrf.mxu0 }
 0x1ab   : > { %v1210_v11 = vpop.f32.mrf.mxu1  ;;  %v3564_v8 = vadd.f32 %v1386_v52, %v1253_v4 }
 0x1ac   : > { %v1255_v16 = vadd.f32 %v1210_v11, %v3516_v28  ;;  %v2708_v25 = vpop.f32.mrf.mxu0 }
 0x1ad   : > { %v2674_v17 = vpop.f32.mrf.mxu1 }
 0x1ae   : > { %v1391_v18 = vpop.f32.mrf.mxu0 }
 0x1af   : > { %v1215_v15 = vpop.f32.mrf.mxu1  ;;  %v3567_v22 = vadd.f32 %v1391_v18, %v1254_v12 }
 0x1b0   : > { %v1256_v19 = vadd.f32 %v1215_v15, %v3519_v37  ;;  %v2711_v23 = vpop.f32.mrf.mxu0 }
 0x1b1   : > { %v2677_v26 = vpop.f32.mrf.mxu1 }
 0x1b2   : > { %v1394_v24 = vpop.f32.mrf.mxu0 }
 0x1b3   : > { %v1218_v20 = vpop.f32.mrf.mxu1  ;;  %v3570_v10 = vadd.f32 %v1394_v24, %v1255_v16 }
 0x1b4   : > { %v1257_v29 = vadd.f32 %v1218_v20, %v3522_v44  ;;  %v2712_v30 = vpop.f32.mrf.mxu0 }
 0x1b5   : > { %v2678_v34 = vpop.f32.mrf.mxu1 }
 0x1b6   : > { %v1399_v0 = vpop.f32.mrf.mxu0  ;;  %v3602_v34 = vld [vmem:[%s3669_s2] ss:$0 sm:$0xff] }
 0x1b7   : > { %v1223_v28 = vpop.f32.mrf.mxu1  ;;  %v3573_v54 = vadd.f32 %v1399_v0, %v1256_v19 }
 0x1b8   : > { %v1258_v27 = vadd.f32 %v1223_v28, %v3525_v53  ;;  %v2715_v38 = vpop.f32.mrf.mxu0 }
 0x1b9   : > { %v2681_v36 = vpop.f32.mrf.mxu1 }
 0x1ba   : > { %v1402_v40 = vpop.f32.mrf.mxu0 }
 0x1bb   : > { %v1226_v37 = vpop.f32.mrf.mxu1  ;;  %v3576_v33 = vadd.f32 %v1402_v40, %v1257_v29 }
 0x1bc   : > { %v1259_v35 = vadd.f32 %v1226_v37, %v3528_v14  ;;  %v2716_v48 = vpop.f32.mrf.mxu0 }
 0x1bd   : > { %v2682_v42 = vpop.f32.mrf.mxu1 }
 0x1be   : > { %v1407_v49 = vpop.f32.mrf.mxu0 }
 0x1bf   : > { %v1231_v44 = vpop.f32.mrf.mxu1  ;;  %v3579_v39 = vadd.f32 %v1407_v49, %v1258_v27 }
 0x1c0   : > { %v1260_v58 = vadd.f32 %v1231_v44, %v3531_v47  ;;  %v2719_v41 = vpop.f32.mrf.mxu0 }
 0x1c1   : > { %v2685_v59 = vpop.f32.mrf.mxu1 }
 0x1c2   : > { %v1410_v43 = vpop.f32.mrf.mxu0 }
 0x1c3   : > { %v1234_v53 = vpop.f32.mrf.mxu1  ;;  %v3582_v55 = vadd.f32 %v1410_v43, %v1259_v35 }
 0x1c4   : > { %v1261_v61 = vadd.f32 %v1234_v53, %v3534_v7  ;;  %v2720_v51 = vpop.f32.mrf.mxu0 }
 0x1c5   : > { %v2686_v62 = vpop.f32.mrf.mxu1 }
 0x1c6   : > { %v1415_v14 = vpop.f32.mrf.mxu0 }
 0x1c7   : > { %v1239_v63 = vpop.f32.mrf.mxu1  ;;  %v3585_v1 = vadd.f32 %v1415_v14, %v1260_v58 }
 0x1c8   : > { %v1262_v4 = vadd.f32 %v1239_v63, %v3537_v50  ;;  %v2723_v5 = vpop.f32.mrf.mxu0 }
 0x1c9   : > { %v2689_v2 = vpop.f32.mrf.mxu1 }
 0x1ca   : > { %v1418_v47 = vpop.f32.mrf.mxu0 }
 0x1cb   : > { %v1242_v6 = vpop.f32.mrf.mxu1  ;;  %v3588_v3 = vadd.f32 %v1418_v47, %v1261_v61 }
 0x1cc   : > { %v1263_v12 = vadd.f32 %v1242_v6, %v3540_v60  ;;  %v2724_v9 = vpop.f32.mrf.mxu0 }
 0x1cd   : > { %v2690_v7 = vpop.f32.mrf.mxu1 }
 0x1ce   : > { %v1423_v13 = vpop.f32.mrf.mxu0 }
 0x1cf   : > { %v3592_v52 = vadd.f32 %v1423_v13, %v1262_v4  ;;  %v1543_v11 = vpop.f32.mrf.mxu1 }
 0x1d0   : > { %v2727_v16 = vpop.f32.mrf.mxu0  ;;  %v1614_v60 = vadd.f32 %v1543_v11, %v3543_v31 }
 0x1d1   : > { %v2733_v25 = vpop.f32.mrf.mxu1 }
 0x1d2   : > { %v1426_v50 = vpop.f32.mrf.mxu0 }
 0x1d3   : > { %v3594_v17 = vadd.f32 %v1426_v50, %v1263_v12  ;;  %v1546_v18 = vpop.f32.mrf.mxu1 }
 0x1d4   : > { %v2728_v15 = vpop.f32.mrf.mxu0  ;;  %v1615_v20 = vadd.f32 %v1546_v18, %v3546_v45 }
 0x1d5   : > { %v2734_v19 = vpop.f32.mrf.mxu1 }
 0x1d6   : > { %v1727_v23 = vpop.f32.mrf.mxu0 }
 0x1d7   : > { %v1551_v26 = vpop.f32.mrf.mxu1  ;;  %v1798_v29 = vadd.f32 %v1727_v23, %v1614_v60 }
 0x1d8   : > { %v2771_v24 = vpop.f32.mrf.mxu0  ;;  %v1616_v37 = vadd.f32 %v1551_v26, %v3549_v56 }
 0x1d9   : > { %v2737_v30 = vpop.f32.mrf.mxu1  ;;  %v1823_v36 = vadd.f32 %v3602_v34, %v1798_v29 }
 0x1da   : > { %v1730_v0 = vpop.f32.mrf.mxu0 }
 0x1db   : > { %v1554_v28 = vpop.f32.mrf.mxu1  ;;  %v1799_v27 = vadd.f32 %v1730_v0, %v1615_v20 }
 0x1dc   : > { %v2772_v38 = vpop.f32.mrf.mxu0  ;;  %v1617_v49 = vadd.f32 %v1554_v28, %v3552_v46 }
 0x1dd   : > { %v1824_v31 = vadd.f32 %v3602_v34, %v1799_v27  ;;  %v2738_v40 = vpop.f32.mrf.mxu1 }
 0x1de   : > { %v1735_v45 = vpop.f32.mrf.mxu0 }
 0x1df   : > { %v2323_v35 = vpack.c.bf16 %v1824_v31, %v1823_v36  ;;  %v1559_v48 = vpop.f32.mrf.mxu1  ;;  %v1800_v44 = vadd.f32 %v1735_v45, %v1616_v37 }
 0x1e0   : > { %v2775_v42 = vpop.f32.mrf.mxu0  ;;  %v1618_v56 = vadd.f32 %v1559_v48, %v3555_v21 }
 0x1e1   : > { %2324 = vst [vmem:[%s3609_s29] sm:$0xff] %v2323_v35   ;;  %v2741_v58 = vpop.f32.mrf.mxu1  ;;  %v1825_v61 = vadd.f32 %v3602_v34, %v1800_v44 }
 0x1e2   : > { %v1738_v41 = vpop.f32.mrf.mxu0 }
 0x1e3   : > { %v1562_v59 = vpop.f32.mrf.mxu1  ;;  %v1801_v43 = vadd.f32 %v1738_v41, %v1617_v49 }
 0x1e4   : > { %v2776_v53 = vpop.f32.mrf.mxu0  ;;  %v1619_v46 = vadd.f32 %v1562_v59, %v3558_v57 }
 0x1e5   : > { %v1826_v51 = vadd.f32 %v3602_v34, %v1801_v43  ;;  %v2742_v62 = vpop.f32.mrf.mxu1 }
 0x1e6   : > { %v1743_v14 = vpop.f32.mrf.mxu0 }
 0x1e7   : > { %v2328_v63 = vpack.c.bf16 %v1826_v51, %v1825_v61  ;;  %v1567_v4 = vpop.f32.mrf.mxu1  ;;  %v1802_v2 = vadd.f32 %v1743_v14, %v1618_v56 }
 0x1e8   : > { %v2779_v5 = vpop.f32.mrf.mxu0  ;;  %v1620_v21 = vadd.f32 %v1567_v4, %v3561_v32 }
 0x1e9   : > { %2365 = vst [vmem:[%s3609_s29 + $0x8] sm:$0xff] %v2328_v63   ;;  %v2745_v47 = vpop.f32.mrf.mxu1  ;;  %v1827_v13 = vadd.f32 %v3602_v34, %v1802_v2 }
 0x1ea   : > { %v1746_v6 = vpop.f32.mrf.mxu0 }
 0x1eb   : > { %v1570_v12 = vpop.f32.mrf.mxu1  ;;  %v1803_v9 = vadd.f32 %v1746_v6, %v1619_v46 }
 0x1ec   : > { %v2780_v7 = vpop.f32.mrf.mxu0  ;;  %v1621_v57 = vadd.f32 %v1570_v12, %v3564_v8 }
 0x1ed   : > { %v1828_v11 = vadd.f32 %v3602_v34, %v1803_v9  ;;  %v2746_v16 = vpop.f32.mrf.mxu1 }
 0x1ee   : > { %v1751_v25 = vpop.f32.mrf.mxu0 }
 0x1ef   : > { %v2333_v50 = vpack.c.bf16 %v1828_v11, %v1827_v13  ;;  %v1575_v18 = vpop.f32.mrf.mxu1  ;;  %v1804_v19 = vadd.f32 %v1751_v25, %v1620_v21 }
 0x1f0   : > { %v2783_v15 = vpop.f32.mrf.mxu0  ;;  %v1622_v32 = vadd.f32 %v1575_v18, %v3567_v22 }
 0x1f1   : > { %2366 = vst [vmem:[%s3609_s29 + $0x10] sm:$0xff] %v2333_v50   ;;  %v2749_v23 = vpop.f32.mrf.mxu1  ;;  %v1829_v29 = vadd.f32 %v3602_v34, %v1804_v19 }
 0x1f2   : > { %v1754_v60 = vpop.f32.mrf.mxu0 }
 0x1f3   : > { %v1578_v26 = vpop.f32.mrf.mxu1  ;;  %v1805_v24 = vadd.f32 %v1754_v60, %v1621_v57 }
 0x1f4   : > { %v2784_v20 = vpop.f32.mrf.mxu0  ;;  %v1623_v8 = vadd.f32 %v1578_v26, %v3570_v10 }
 0x1f5   : > { %v1830_v30 = vadd.f32 %v3602_v34, %v1805_v24  ;;  %v2750_v0 = vpop.f32.mrf.mxu1 }
 0x1f6   : > { %v1759_v28 = vpop.f32.mrf.mxu0 }
 0x1f7   : > { %v2338_v27 = vpack.c.bf16 %v1830_v30, %v1829_v29  ;;  %v1583_v38 = vpop.f32.mrf.mxu1  ;;  %v1806_v31 = vadd.f32 %v1759_v28, %v1622_v32 }
 0x1f8   : > { %v2787_v36 = vpop.f32.mrf.mxu0  ;;  %v1624_v22 = vadd.f32 %v1583_v38, %v3573_v54 }
 0x1f9   : > { %2367 = vst [vmem:[%s3609_s29 + $0x18] sm:$0xff] %v2338_v27   ;;  %v2753_v40 = vpop.f32.mrf.mxu1  ;;  %v1831_v42 = vadd.f32 %v3602_v34, %v1806_v31 }
 0x1fa   : > { %v1762_v45 = vpop.f32.mrf.mxu0 }
 0x1fb   : > { %v1586_v37 = vpop.f32.mrf.mxu1  ;;  %v1807_v35 = vadd.f32 %v1762_v45, %v1623_v8 }
 0x1fc   : > { %v2788_v48 = vpop.f32.mrf.mxu0  ;;  %v1625_v10 = vadd.f32 %v1586_v37, %v3576_v33 }
 0x1fd   : > { %v1832_v49 = vadd.f32 %v3602_v34, %v1807_v35  ;;  %v2754_v44 = vpop.f32.mrf.mxu1 }
 0x1fe   : > { %v1767_v58 = vpop.f32.mrf.mxu0 }
 0x1ff   : > { %v2343_v41 = vpack.c.bf16 %v1832_v49, %v1831_v42  ;;  %v1591_v59 = vpop.f32.mrf.mxu1  ;;  %v1808_v53 = vadd.f32 %v1767_v58, %v1624_v22 }
 0x200   : > { %v2791_v43 = vpop.f32.mrf.mxu0  ;;  %v1626_v54 = vadd.f32 %v1591_v59, %v3579_v39 }
 0x201   : > { %2368 = vst [vmem:[%s3609_s29 + $0x20] sm:$0xff] %v2343_v41   ;;  %v2757_v61 = vpop.f32.mrf.mxu1  ;;  %v1833_v63 = vadd.f32 %v3602_v34, %v1808_v53 }
 0x202   : > { %v1770_v51 = vpop.f32.mrf.mxu0 }
 0x203   : > { %v1594_v62 = vpop.f32.mrf.mxu1  ;;  %v1809_v14 = vadd.f32 %v1770_v51, %v1625_v10 }
 0x204   : > { %v2792_v56 = vpop.f32.mrf.mxu0  ;;  %v1627_v33 = vadd.f32 %v1594_v62, %v3582_v55 }
 0x205   : > { %v1834_v4 = vadd.f32 %v3602_v34, %v1809_v14  ;;  %v2758_v5 = vpop.f32.mrf.mxu1 }
 0x206   : > { %v1775_v46 = vpop.f32.mrf.mxu0 }
 0x207   : > { %v2348_v2 = vpack.c.bf16 %v1834_v4, %v1833_v63  ;;  %v1599_v47 = vpop.f32.mrf.mxu1  ;;  %v1810_v12 = vadd.f32 %v1775_v46, %v1626_v54 }
 0x208   : > { %v2795_v6 = vpop.f32.mrf.mxu0  ;;  %v1628_v39 = vadd.f32 %v1599_v47, %v3585_v1 }
 0x209   : > { %2369 = vst [vmem:[%s3609_s29 + $0x28] sm:$0xff] %v2348_v2   ;;  %v2761_v9 = vpop.f32.mrf.mxu1  ;;  %v1835_v25 = vadd.f32 %v3602_v34, %v1810_v12 }
 0x20a   : > { %v1778_v7 = vpop.f32.mrf.mxu0 }
 0x20b   : > { %v1602_v13 = vpop.f32.mrf.mxu1  ;;  %v1811_v11 = vadd.f32 %v1778_v7, %v1627_v33 }
 0x20c   : > { %v2796_v16 = vpop.f32.mrf.mxu0  ;;  %v1629_v55 = vadd.f32 %v1602_v13, %v3588_v3 }
 0x20d   : > { %v1836_v21 = vadd.f32 %v3602_v34, %v1811_v11  ;;  %v2762_v50 = vpop.f32.mrf.mxu1 }
 0x20e   : > { %v1783_v18 = vpop.f32.mrf.mxu0 }
 0x20f   : > { %v2353_v15 = vpack.c.bf16 %v1836_v21, %v1835_v25  ;;  %v1607_v57 = vpop.f32.mrf.mxu1  ;;  %v1812_v23 = vadd.f32 %v1783_v18, %v1628_v39 }
 0x210   : > { %v2799_v19 = vpop.f32.mrf.mxu0  ;;  %v1630_v30 = vadd.f32 %v1607_v57, %v3592_v52 }
 0x211   : > { %2370 = vst [vmem:[%s3609_s29 + $0x30] sm:$0xff] %v2353_v15   ;;  %v2765_v60 = vpop.f32.mrf.mxu1  ;;  %v1837_v0 = vadd.f32 %v3602_v34, %v1812_v23 }
 0x212   : > { %v1786_v26 = vpop.f32.mrf.mxu0 }
 0x213   : > { %v1610_v24 = vpop.f32.mrf.mxu1  ;;  %v1813_v20 = vadd.f32 %v1786_v26, %v1629_v55 }
 0x214   : > { %v2800_v29 = vpop.f32.mrf.mxu0  ;;  %v1631_v36 = vadd.f32 %v1610_v24, %v3594_v17 }
 0x215   : > { %v1838_v1 = vadd.f32 %v3602_v34, %v1813_v20  ;;  %v2766_v28 = vpop.f32.mrf.mxu1 }
 0x216   : > { %v1791_v32 = vpop.f32.mrf.mxu0 }
 0x217   : > { %v2358_v27 = vpack.c.bf16 %v1838_v1, %v1837_v0  ;;  %v1814_v38 = vadd.f32 %v1791_v32, %v1630_v30 }
 0x218   : > { %v2803_v3 = vpop.f32.mrf.mxu0 }
 0x219   : > { %2371 = vst [vmem:[%s3609_s29 + $0x38] sm:$0xff] %v2358_v27   ;;  %v1839_v8 = vadd.f32 %v3602_v34, %v1814_v38 }
 0x21a   : > { %v1794_v31 = vpop.f32.mrf.mxu0 }
 0x21b   : > { %v1815_v40 = vadd.f32 %v1794_v31, %v1631_v36 }
 0x21c   : > { %v2804_v45 = vpop.f32.mrf.mxu0 }
 0x21d   : > { %v1840_v52 = vadd.f32 %v3602_v34, %v1815_v40 }
 0x21f   : > { %v2363_v37 = vpack.c.bf16 %v1840_v52, %v1839_v8 }
 0x221   : > { %2372 = vst [vmem:[%s3609_s29 + $0x40] sm:$0xff] %v2363_v37  }
 0x222 PF: > { %s13_s16 = sadd.s32 1, %s2889_s16   ;;  %s3671_s12 = smov %s2881_s14 }
 0x223   : > { %p10_p7 = scmp.ge.s32.totalorder %s13_s16, 6   ;;  %s3672_s13 = smov %s2885_s15 }
 0x224   : > { %s3673_s14 = smov %s3676_s17  ;;  %s3674_s15 = smov %s3680_s18 }
 0x225   :  { %12 = sbr.rel (!%p10_p7) target bundleno = 3 (0x3), region = 79 }

</bundles_post_ra>
